<compile_context>
chip_gen: v7x
topology: tpu7x:2x2x1
jax: 0.10.0
libtpu: 0.0.40
codegen_flags: <defaults>
</compile_context>

<pallas_src>
import math

import jax
import jax.numpy as jnp
from jax.experimental import pallas as pl
from jax.experimental.pallas import tpu as pltpu

# ---- configs (small, consistent with the module) ---------------------------
DIM = 32             # configs.dim
NUM_HEADS = 4        # configs.num_heads
HEAD_SIZE = DIM // NUM_HEADS
KERNELS = (1, 3, 5)  # configs.kernels (odd -> 'same' padding k//2 keeps length)
SEQ = 16
BATCH = 2
EPS = 1e-6
NEG_INF = -1e30
TOTAL_TAPS = sum(KERNELS)
# Distinct temporal shifts across all conv taps ('same' padding, odd kernels).
SHIFTS = tuple(range(-(max(KERNELS) // 2), max(KERNELS) // 2 + 1))   # (-2,-1,0,1,2)
NSHIFT = len(SHIFTS)
CENTER = SHIFTS.index(0)


# ---- shared math helpers (pure jnp; used inside the kernel and in the ref) --
def _gelu_tanh(x):
    # TODO(synk): torch nn.GELU() default is the erf-exact form; erf has no
    # guaranteed Mosaic lowering, so use the tanh approximation (~3e-4 max err).
    c = math.sqrt(2.0 / math.pi)
    return 0.5 * x * (1.0 + jnp.tanh(c * (x + 0.044715 * x * x * x)))


def _layer_norm(h, g, b):
    mu = jnp.mean(h, axis=-1, keepdims=True)
    var = jnp.mean((h - mu) ** 2, axis=-1, keepdims=True)
    return (h - mu) * jax.lax.rsqrt(var + EPS) * g + b


# ---- Pallas kernel ----------------------------------------------------------
def _make_kernel(B, L, D):
    BL = B * L
    HB = NUM_HEADS * BL          # 128: head-packed lane width

    def mca_kernel(x_ref, smat_ref, wqkv_ref, w12_ref, vecs_ref, attn_ref, o_ref):
        x = x_ref[...]                                   # (BL, D) f32

        # packed small vectors (one DMA instead of 7)
        vecs = vecs_ref[...]                             # (8, 3D)
        ln1_g, ln1_b = vecs[0:1, 0:D], vecs[1:2, 0:D]
        ln2_g, ln2_b = vecs[2:3, 0:D], vecs[3:4, 0:D]
        b1, b2 = vecs[4:5, 0:D], vecs[5:6, 0:D]
        bqkv = vecs[6:7, :]                              # (1, 3D)

        # packed attention constants (one DMA); all slices sublane-aligned
        abias4 = attn_ref[0:BL, :]                       # (BL, HB) additive bias, tiled per head
        segones = attn_ref[BL:BL + HB, :]                # (HB, HB) block-diag ones (per-head sum)
        hmask = attn_ref[BL + HB:BL + 2 * HB, 0:D]       # (HB, D)  head-block column mask

        # ---- LayerNorm1 ----
        h = _layer_norm(x, ln1_g, ln1_b)

        # ---- fused TemporalContextModule for Q|K|V via banded-shift matmuls ----
        # qkv = sum_s (S_s @ h) @ W_s ; S_0 == I so its left matmul is skipped.
        # TODO(synk): exact EAMAT TemporalContextModule aggregation not given in
        # the prompt; assumed sum of per-kernel Conv1D(in, out, k, pad=k//2).
        qkv = jnp.dot(h, wqkv_ref[CENTER], preferred_element_type=jnp.float32)
        for si, s in enumerate(SHIFTS):
            if s == 0:
                continue
            hs = jnp.dot(smat_ref[si], h, preferred_element_type=jnp.float32)
            qkv = qkv + jnp.dot(hs, wqkv_ref[si], preferred_element_type=jnp.float32)
        qkv = qkv + bqkv                                 # (BL, 3D)

        q = qkv[:, 0:D]            # already pre-scaled by 1/sqrt(head_size)
        k = qkv[:, D:2 * D]
        v = qkv[:, 2 * D:3 * D]

        # ---- lane-packed multi-head attention (batch stays folded in rows) ----
        # k_packed / v_packed: sublane-tile K / V over heads, mask to each
        # head's column block.  Heads live in the 128-wide lane axis of scores.
        k_packed = jnp.concatenate([k] * NUM_HEADS, axis=0) * hmask    # (HB, D)
        v_packed = jnp.concatenate([v] * NUM_HEADS, axis=0) * hmask    # (HB, D)

        scores = jnp.einsum("qd,kd->qk", q, k_packed,
                            preferred_element_type=jnp.float32) + abias4  # (BL, HB)
        scores = scores - jnp.max(scores, axis=-1, keepdims=True)  # one global row max
        p = jnp.exp(scores)
        denom = jnp.dot(p, segones, preferred_element_type=jnp.float32)   # per-head sums
        p = p * pl.reciprocal(denom, approx=True)        # EUP slot, VALU stays free
        ctx = jnp.dot(p, v_packed, preferred_element_type=jnp.float32)    # (BL, D), heads in place

        # ---- residual + LayerNorm2 + 1x1-conv FFN (GELU) + residual ----
        residual = x + ctx
        h2 = _layer_norm(residual, ln2_g, ln2_b)
        o1 = jnp.dot(h2, w12_ref[0], preferred_element_type=jnp.float32) + b1
        o2 = jnp.dot(_gelu_tanh(o1), w12_ref[1], preferred_element_type=jnp.float32) + b2
        o_ref[...] = (o2 + residual).astype(o_ref.dtype)

    return mca_kernel


# ---- host-side packing (run ONCE at init; not per call) ----------------------
def _tap_shifts():
    shifts = []
    for ksz in KERNELS:
        pad = ksz // 2
        for j in range(ksz):
            shifts.append(j - pad)
    return shifts            # length TOTAL_TAPS, same tap order as init_params


def pack_inputs(params, mask, B, L):
    """Fold weights / build constants once.  Only `abias4` depends on `mask`;
    everything else depends only on the parameters."""
    D = DIM
    BL = B * L
    HB = NUM_HEADS * BL
    scale = 1.0 / math.sqrt(HEAD_SIZE)
    tap_shift = _tap_shifts()

    # per-shift folded conv weights (exact linear reparameterization of the
    # summed per-kernel Conv1d taps)
    def fold(w):                                  # (TOTAL_TAPS, D, D) -> (NSHIFT, D, D)
        blocks = []
        for s in SHIFTS:
            acc = jnp.zeros((D, D), jnp.float32)
            for t, ts in enumerate(tap_shift):
                if ts == s:
                    acc = acc + w[t]
            blocks.append(acc)
        return jnp.stack(blocks, axis=0)

    wqkv = jnp.concatenate([fold(params["wq"]) * scale,        # fold 1/sqrt(head_size) into Q
                            fold(params["wk"]),
                            fold(params["wv"])], axis=2)       # (NSHIFT, D, 3D)

    # banded shift-select matrices: S_s[i, j] = 1 iff j == i + s and same sequence
    idx = jnp.arange(BL)
    seq = idx // L
    same_seq = seq[:, None] == seq[None, :]
    smat = jnp.stack(
        [((idx[None, :] == idx[:, None] + s) & same_seq).astype(jnp.float32)
         for s in SHIFTS], axis=0)                             # (NSHIFT, BL, BL)

    # small vectors packed into one (8, 3D) buffer
    def pad_d(v):                                              # (1, D) -> (1, 3D)
        return jnp.pad(v, ((0, 0), (0, 2 * D)))
    bqkv = jnp.concatenate([params["bq"] * scale, params["bk"], params["bv"]], axis=1)
    vecs = jnp.concatenate([
        pad_d(params["ln1_g"]), pad_d(params["ln1_b"]),
        pad_d(params["ln2_g"]), pad_d(params["ln2_b"]),
        pad_d(params["b1"]), pad_d(params["b2"]),
        bqkv, jnp.zeros((1, 3 * D), jnp.float32)], axis=0)     # (8, 3D)

    w12 = jnp.stack([params["w1"], params["w2"]], axis=0)      # (2, D, D)

    # packed attention constants:
    #   abias4  : additive bias (-1e30 on cross-sequence pairs / masked keys),
    #             tiled once per head along lanes               (BL, HB)
    #   segones : block-diagonal ones for per-head softmax sums (HB, HB)
    #   hmask   : head-block column mask for K/V packing        (HB, D) padded to HB lanes
    keym = mask.reshape(1, BL).astype(jnp.float32)
    allow = same_seq.astype(jnp.float32) * keym
    abias4 = jnp.tile((1.0 - allow) * NEG_INF, (1, NUM_HEADS))            # (BL, HB)
    head_of = jnp.arange(HB) // BL
    segones = (head_of[:, None] == head_of[None, :]).astype(jnp.float32)  # (HB, HB)
    hmask = (head_of[:, None] == (jnp.arange(D) // HEAD_SIZE)[None, :]).astype(jnp.float32)
    attn_pack = jnp.concatenate(
        [abias4, segones, jnp.pad(hmask, ((0, 0), (0, HB - D)))], axis=0)  # (BL+2*HB, HB)

    return {"smat": smat, "wqkv": wqkv, "w12": w12, "vecs": vecs, "attn": attn_pack}


# ---- wrapper (per-call: reshape + one pallas_call) ----------------------------
@jax.jit
def multi_conv_attention(x, packed):
    B, L, D = x.shape
    BL = B * L
    HB = NUM_HEADS * BL
    x2 = x.reshape(BL, D)

    def full(shape):
        return pl.BlockSpec(shape, lambda i, _s=shape: (0,) * len(_s))

    in_specs = [
        full((BL, D)),                    # x (batch folded into rows)
        full((NSHIFT, BL, BL)),           # banded shift-select matrices
        full((NSHIFT, D, 3 * D)),         # per-shift folded Q|K|V weights
        full((2, D, D)),                  # FFN weights
        full((8, 3 * D)),                 # packed small vectors
        full((BL + 2 * HB, HB)),          # packed attention constants
    ]

    flops = ((NSHIFT - 1) * 2 * BL * BL * D        # shift matmuls
             + NSHIFT * 2 * BL * D * 3 * D         # per-shift weight matmuls
             + 2 * BL * D * HB                     # scores
             + 2 * BL * HB * HB                    # segmented denominator
             + 2 * BL * HB * D                     # PV
             + 2 * (2 * BL * D * D)                # FFN
             + 30 * BL * D)                        # LN / residual / misc
    transcendentals = 2 * BL * HB + 2 * BL + BL * D
    bytes_accessed = 4 * (BL * D + NSHIFT * BL * BL + NSHIFT * D * 3 * D
                          + 2 * D * D + 8 * 3 * D + (BL + 2 * HB) * HB + BL * D)

    # TODO(synk): on v7x (2 TensorCores) a grid=(B,) split with a per-sequence
    # bias would use both cores; the single-step folded-batch form is kept here
    # since v5e/v6e have one TC and the kernel is launch/DMA-overhead bound.
    out = pl.pallas_call(
        _make_kernel(B, L, D),
        out_shape=jax.ShapeDtypeStruct((BL, D), x.dtype),
        grid=(1,),
        in_specs=in_specs,
        out_specs=pl.BlockSpec((BL, D), lambda i: (0, 0)),
        compiler_params=pltpu.CompilerParams(dimension_semantics=("arbitrary",)),
        cost_estimate=pl.CostEstimate(flops=flops,
                                      transcendentals=transcendentals,
                                      bytes_accessed=bytes_accessed),
    )(x2, packed["smat"], packed["wqkv"], packed["w12"], packed["vecs"], packed["attn"])
    return out.reshape(B, L, D)


# ---- deterministic parameter init -------------------------------------------
def init_params(key):
    ks = jax.random.split(key, 16)

    def w(k, shape, scale=0.08):
        return jax.random.normal(k, shape, jnp.float32) * scale

    return {
        "ln1_g": 1.0 + 0.1 * jax.random.normal(ks[0], (1, DIM), jnp.float32),
        "ln1_b": 0.05 * jax.random.normal(ks[1], (1, DIM), jnp.float32),
        "ln2_g": 1.0 + 0.1 * jax.random.normal(ks[2], (1, DIM), jnp.float32),
        "ln2_b": 0.05 * jax.random.normal(ks[3], (1, DIM), jnp.float32),
        # conv weights stored as (tap, in_dim, out_dim); biases pre-summed over branches
        "wq": w(ks[4], (TOTAL_TAPS, DIM, DIM)), "bq": w(ks[5], (1, DIM), 0.02),
        "wk": w(ks[6], (TOTAL_TAPS, DIM, DIM)), "bk": w(ks[7], (1, DIM), 0.02),
        "wv": w(ks[8], (TOTAL_TAPS, DIM, DIM)), "bv": w(ks[9], (1, DIM), 0.02),
        "w1": w(ks[10], (DIM, DIM)), "b1": w(ks[11], (1, DIM), 0.02),
        "w2": w(ks[12], (DIM, DIM)), "b2": w(ks[13], (1, DIM), 0.02),
    }


# ---- pure-JAX reference (same math, original per-tap weights, per-head attn) --
def reference(x, mask, params):
    B, L, D = x.shape

    def ln(h, g, b):
        mu = jnp.mean(h, -1, keepdims=True)
        var = jnp.mean((h - mu) ** 2, -1, keepdims=True)
        return (h - mu) / jnp.sqrt(var + EPS) * g[0] + b[0]

    def tcm(h, w, bias):
        out = jnp.zeros_like(h) + bias[0]
        t = 0
        for ksz in KERNELS:
            pad = ksz // 2
            hp = jnp.pad(h, ((0, 0), (pad, pad), (0, 0)))
            for j in range(ksz):
                out = out + jnp.einsum("blc,cd->bld", hp[:, j:j + L, :], w[t])
                t += 1
        return out

    h = ln(x, params["ln1_g"], params["ln1_b"])
    q = tcm(h, params["wq"], params["bq"])
    k = tcm(h, params["wk"], params["bk"])
    v = tcm(h, params["wv"], params["bv"])

    def split(z):
        return z.reshape(B, L, NUM_HEADS, HEAD_SIZE).transpose(0, 2, 1, 3)

    qh, kh, vh = split(q), split(k), split(v)
    sc = jnp.einsum("bhqd,bhkd->bhqk", qh, kh) / math.sqrt(HEAD_SIZE)
    sc = sc + (1.0 - mask)[:, None, None, :] * NEG_INF
    p = jax.nn.softmax(sc, axis=-1)
    ctx = jnp.einsum("bhqk,bhkd->bhqd", p, vh).transpose(0, 2, 1, 3).reshape(B, L, D)
    residual = x + ctx
    h2 = ln(residual, params["ln2_g"], params["ln2_b"])
    o1 = jnp.einsum("bld,de->ble", h2, params["w1"]) + params["b1"][0]
    o2 = jnp.einsum("bld,de->ble", _gelu_tanh(o1), params["w2"]) + params["b2"][0]
    return o2 + residual


if __name__ == "__main__":
    key = jax.random.PRNGKey(0)
    kx, kp = jax.random.split(key, 2)
    x = jax.random.normal(kx, (BATCH, SEQ, DIM), jnp.float32)
    mask = jnp.ones((BATCH, SEQ), jnp.float32).at[0, SEQ - 4:].set(0.0)
    params = init_params(kp)

    # Hoisted one-time packing (weights + mask-dependent attention bias).
    packed = pack_inputs(params, mask, BATCH, SEQ)

    out = multi_conv_attention(x, packed)
    out = jax.block_until_ready(out)

    ref = reference(x, mask, params)
    assert out.shape == (BATCH, SEQ, DIM)
    err = float(jnp.max(jnp.abs(out - ref)))
    assert jnp.allclose(out, ref, atol=5e-3, rtol=5e-3), f"max abs err {err}"
    print("KERNEL_OK")
</pallas_src>

<mosaic_0001>
module attributes {stable_mosaic.version = 11 : i64} {
  func.func @mca_kernel(%arg0: i32, %arg1: memref<32x32xf32, #tpu.memory_space<vmem>>, %arg2: memref<5x32x32xf32, #tpu.memory_space<vmem>>, %arg3: memref<5x32x96xf32, #tpu.memory_space<vmem>>, %arg4: memref<2x32x32xf32, #tpu.memory_space<vmem>>, %arg5: memref<8x96xf32, #tpu.memory_space<vmem>>, %arg6: memref<288x128xf32, #tpu.memory_space<vmem>>, %arg7: memref<32x32xf32, #tpu.memory_space<vmem>>) attributes {dimension_semantics = [#tpu.dimension_semantics<arbitrary>], iteration_bounds = array<i64: 1>, scalar_prefetch = 0 : i64, scratch_operands = 0 : i64, tpu.core_type = #tpu.core_type<tc>, window_params = [{pipeline_mode = #tpu.pipeline_mode<synchronous>, transform_indices = @transform_0, window_bounds = array<i64: 32, 32>}, {pipeline_mode = #tpu.pipeline_mode<synchronous>, transform_indices = @transform_1, window_bounds = array<i64: 5, 32, 32>}, {pipeline_mode = #tpu.pipeline_mode<synchronous>, transform_indices = @transform_2, window_bounds = array<i64: 5, 32, 96>}, {pipeline_mode = #tpu.pipeline_mode<synchronous>, transform_indices = @transform_3, window_bounds = array<i64: 2, 32, 32>}, {pipeline_mode = #tpu.pipeline_mode<synchronous>, transform_indices = @transform_4, window_bounds = array<i64: 8, 96>}, {pipeline_mode = #tpu.pipeline_mode<synchronous>, transform_indices = @transform_5, window_bounds = array<i64: 288, 128>}, {pipeline_mode = #tpu.pipeline_mode<synchronous>, transform_indices = @transform_6, window_bounds = array<i64: 32, 32>}]} {
    %c0 = arith.constant 0 : index
    %c0_0 = arith.constant 0 : index
    %0 = vector.load %arg1[%c0, %c0_0] : memref<32x32xf32, #tpu.memory_space<vmem>>, vector<32x32xf32>
    %c0_1 = arith.constant 0 : index
    %c0_2 = arith.constant 0 : index
    %1 = vector.load %arg5[%c0_1, %c0_2] : memref<8x96xf32, #tpu.memory_space<vmem>>, vector<8x96xf32>
    %2 = vector.extract_strided_slice %1 {offsets = [0, 0], sizes = [1, 32], strides = [1, 1]} : vector<8x96xf32> to vector<1x32xf32>
    %3 = vector.extract_strided_slice %1 {offsets = [1, 0], sizes = [1, 32], strides = [1, 1]} : vector<8x96xf32> to vector<1x32xf32>
    %4 = vector.extract_strided_slice %1 {offsets = [2, 0], sizes = [1, 32], strides = [1, 1]} : vector<8x96xf32> to vector<1x32xf32>
    %5 = vector.extract_strided_slice %1 {offsets = [3, 0], sizes = [1, 32], strides = [1, 1]} : vector<8x96xf32> to vector<1x32xf32>
    %6 = vector.extract_strided_slice %1 {offsets = [4, 0], sizes = [1, 32], strides = [1, 1]} : vector<8x96xf32> to vector<1x32xf32>
    %7 = vector.extract_strided_slice %1 {offsets = [5, 0], sizes = [1, 32], strides = [1, 1]} : vector<8x96xf32> to vector<1x32xf32>
    %8 = vector.extract_strided_slice %1 {offsets = [6, 0], sizes = [1, 96], strides = [1, 1]} : vector<8x96xf32> to vector<1x96xf32>
    %c0_3 = arith.constant 0 : index
    %c0_4 = arith.constant 0 : index
    %9 = vector.load %arg6[%c0_3, %c0_4] : memref<288x128xf32, #tpu.memory_space<vmem>>, vector<32x128xf32>
    %c32 = arith.constant 32 : index
    %c0_5 = arith.constant 0 : index
    %10 = vector.load %arg6[%c32, %c0_5] : memref<288x128xf32, #tpu.memory_space<vmem>>, vector<128x128xf32>
    %c160 = arith.constant 160 : index
    %c0_6 = arith.constant 0 : index
    %11 = vector.load %arg6[%c160, %c0_6] : memref<288x128xf32, #tpu.memory_space<vmem>>, vector<128x32xf32>
    %cst = arith.constant dense<0.000000e+00> : vector<32xf32>
    %12 = vector.multi_reduction <add>, %0, %cst [1] : vector<32x32xf32> to vector<32xf32>
    %13 = vector.shape_cast %12 : vector<32xf32> to vector<32x1xf32>
    %cst_7 = arith.constant 3.200000e+01 : f32
    %14 = vector.broadcast %cst_7 : f32 to vector<32x1xf32>
    %15 = arith.divf %13, %14 : vector<32x1xf32>
    %16 = vector.broadcast %15 : vector<32x1xf32> to vector<32x32xf32>
    %17 = arith.subf %0, %16 : vector<32x32xf32>
    %18 = arith.mulf %17, %17 : vector<32x32xf32>
    %cst_8 = arith.constant dense<0.000000e+00> : vector<32xf32>
    %19 = vector.multi_reduction <add>, %18, %cst_8 [1] : vector<32x32xf32> to vector<32xf32>
    %20 = vector.shape_cast %19 : vector<32xf32> to vector<32x1xf32>
    %cst_9 = arith.constant 3.200000e+01 : f32
    %21 = vector.broadcast %cst_9 : f32 to vector<32x1xf32>
    %22 = arith.divf %20, %21 : vector<32x1xf32>
    %23 = vector.broadcast %15 : vector<32x1xf32> to vector<32x32xf32>
    %24 = arith.subf %0, %23 : vector<32x32xf32>
    %cst_10 = arith.constant 9.99999997E-7 : f32
    %25 = vector.broadcast %cst_10 : f32 to vector<32x1xf32>
    %26 = arith.addf %22, %25 : vector<32x1xf32>
    %27 = math.rsqrt %26 : vector<32x1xf32>
    %28 = vector.broadcast %27 : vector<32x1xf32> to vector<32x32xf32>
    %29 = arith.mulf %24, %28 : vector<32x32xf32>
    %30 = vector.broadcast %2 : vector<1x32xf32> to vector<32x32xf32>
    %31 = arith.mulf %29, %30 : vector<32x32xf32>
    %32 = vector.broadcast %3 : vector<1x32xf32> to vector<32x32xf32>
    %33 = arith.addf %31, %32 : vector<32x32xf32>
    %c2 = arith.constant 2 : index
    %c0_11 = arith.constant 0 : index
    %c0_12 = arith.constant 0 : index
    %34 = vector.load %arg3[%c2, %c0_11, %c0_12] : memref<5x32x96xf32, #tpu.memory_space<vmem>>, vector<1x32x96xf32>
    %35 = vector.shape_cast %34 : vector<1x32x96xf32> to vector<32x96xf32>
    %cst_13 = arith.constant dense<0.000000e+00> : vector<32x96xf32>
    %36 = tpu.matmul %33, %35, %cst_13 {dimension_numbers = #tpu.dot_dimension_numbers<[1], [0], [0], [1], [0, 0, 1, 1], [], []>} : vector<32x32xf32>, vector<32x96xf32>, vector<32x96xf32> -> vector<32x96xf32>
    %c0_14 = arith.constant 0 : index
    %c0_15 = arith.constant 0 : index
    %c0_16 = arith.constant 0 : index
    %37 = vector.load %arg2[%c0_14, %c0_15, %c0_16] : memref<5x32x32xf32, #tpu.memory_space<vmem>>, vector<1x32x32xf32>
    %38 = vector.shape_cast %37 : vector<1x32x32xf32> to vector<32x32xf32>
    %cst_17 = arith.constant dense<0.000000e+00> : vector<32x32xf32>
    %39 = tpu.matmul %38, %33, %cst_17 {dimension_numbers = #tpu.dot_dimension_numbers<[1], [0], [0], [1], [0, 0, 1, 1], [], []>} : vector<32x32xf32>, vector<32x32xf32>, vector<32x32xf32> -> vector<32x32xf32>
    %c0_18 = arith.constant 0 : index
    %c0_19 = arith.constant 0 : index
    %c0_20 = arith.constant 0 : index
    %40 = vector.load %arg3[%c0_18, %c0_19, %c0_20] : memref<5x32x96xf32, #tpu.memory_space<vmem>>, vector<1x32x96xf32>
    %41 = vector.shape_cast %40 : vector<1x32x96xf32> to vector<32x96xf32>
    %cst_21 = arith.constant dense<0.000000e+00> : vector<32x96xf32>
    %42 = tpu.matmul %39, %41, %cst_21 {dimension_numbers = #tpu.dot_dimension_numbers<[1], [0], [0], [1], [0, 0, 1, 1], [], []>} : vector<32x32xf32>, vector<32x96xf32>, vector<32x96xf32> -> vector<32x96xf32>
    %43 = arith.addf %36, %42 : vector<32x96xf32>
    %c1 = arith.constant 1 : index
    %c0_22 = arith.constant 0 : index
    %c0_23 = arith.constant 0 : index
    %44 = vector.load %arg2[%c1, %c0_22, %c0_23] : memref<5x32x32xf32, #tpu.memory_space<vmem>>, vector<1x32x32xf32>
    %45 = vector.shape_cast %44 : vector<1x32x32xf32> to vector<32x32xf32>
    %cst_24 = arith.constant dense<0.000000e+00> : vector<32x32xf32>
    %46 = tpu.matmul %45, %33, %cst_24 {dimension_numbers = #tpu.dot_dimension_numbers<[1], [0], [0], [1], [0, 0, 1, 1], [], []>} : vector<32x32xf32>, vector<32x32xf32>, vector<32x32xf32> -> vector<32x32xf32>
    %c1_25 = arith.constant 1 : index
    %c0_26 = arith.constant 0 : index
    %c0_27 = arith.constant 0 : index
    %47 = vector.load %arg3[%c1_25, %c0_26, %c0_27] : memref<5x32x96xf32, #tpu.memory_space<vmem>>, vector<1x32x96xf32>
    %48 = vector.shape_cast %47 : vector<1x32x96xf32> to vector<32x96xf32>
    %cst_28 = arith.constant dense<0.000000e+00> : vector<32x96xf32>
    %49 = tpu.matmul %46, %48, %cst_28 {dimension_numbers = #tpu.dot_dimension_numbers<[1], [0], [0], [1], [0, 0, 1, 1], [], []>} : vector<32x32xf32>, vector<32x96xf32>, vector<32x96xf32> -> vector<32x96xf32>
    %50 = arith.addf %43, %49 : vector<32x96xf32>
    %c3 = arith.constant 3 : index
    %c0_29 = arith.constant 0 : index
    %c0_30 = arith.constant 0 : index
    %51 = vector.load %arg2[%c3, %c0_29, %c0_30] : memref<5x32x32xf32, #tpu.memory_space<vmem>>, vector<1x32x32xf32>
    %52 = vector.shape_cast %51 : vector<1x32x32xf32> to vector<32x32xf32>
    %cst_31 = arith.constant dense<0.000000e+00> : vector<32x32xf32>
    %53 = tpu.matmul %52, %33, %cst_31 {dimension_numbers = #tpu.dot_dimension_numbers<[1], [0], [0], [1], [0, 0, 1, 1], [], []>} : vector<32x32xf32>, vector<32x32xf32>, vector<32x32xf32> -> vector<32x32xf32>
    %c3_32 = arith.constant 3 : index
    %c0_33 = arith.constant 0 : index
    %c0_34 = arith.constant 0 : index
    %54 = vector.load %arg3[%c3_32, %c0_33, %c0_34] : memref<5x32x96xf32, #tpu.memory_space<vmem>>, vector<1x32x96xf32>
    %55 = vector.shape_cast %54 : vector<1x32x96xf32> to vector<32x96xf32>
    %cst_35 = arith.constant dense<0.000000e+00> : vector<32x96xf32>
    %56 = tpu.matmul %53, %55, %cst_35 {dimension_numbers = #tpu.dot_dimension_numbers<[1], [0], [0], [1], [0, 0, 1, 1], [], []>} : vector<32x32xf32>, vector<32x96xf32>, vector<32x96xf32> -> vector<32x96xf32>
    %57 = arith.addf %50, %56 : vector<32x96xf32>
    %c4 = arith.constant 4 : index
    %c0_36 = arith.constant 0 : index
    %c0_37 = arith.constant 0 : index
    %58 = vector.load %arg2[%c4, %c0_36, %c0_37] : memref<5x32x32xf32, #tpu.memory_space<vmem>>, vector<1x32x32xf32>
    %59 = vector.shape_cast %58 : vector<1x32x32xf32> to vector<32x32xf32>
    %cst_38 = arith.constant dense<0.000000e+00> : vector<32x32xf32>
    %60 = tpu.matmul %59, %33, %cst_38 {dimension_numbers = #tpu.dot_dimension_numbers<[1], [0], [0], [1], [0, 0, 1, 1], [], []>} : vector<32x32xf32>, vector<32x32xf32>, vector<32x32xf32> -> vector<32x32xf32>
    %c4_39 = arith.constant 4 : index
    %c0_40 = arith.constant 0 : index
    %c0_41 = arith.constant 0 : index
    %61 = vector.load %arg3[%c4_39, %c0_40, %c0_41] : memref<5x32x96xf32, #tpu.memory_space<vmem>>, vector<1x32x96xf32>
    %62 = vector.shape_cast %61 : vector<1x32x96xf32> to vector<32x96xf32>
    %cst_42 = arith.constant dense<0.000000e+00> : vector<32x96xf32>
    %63 = tpu.matmul %60, %62, %cst_42 {dimension_numbers = #tpu.dot_dimension_numbers<[1], [0], [0], [1], [0, 0, 1, 1], [], []>} : vector<32x32xf32>, vector<32x96xf32>, vector<32x96xf32> -> vector<32x96xf32>
    %64 = arith.addf %57, %63 : vector<32x96xf32>
    %65 = vector.broadcast %8 : vector<1x96xf32> to vector<32x96xf32>
    %66 = arith.addf %64, %65 : vector<32x96xf32>
    %67 = vector.extract_strided_slice %66 {offsets = [0, 0], sizes = [32, 32], strides = [1, 1]} : vector<32x96xf32> to vector<32x32xf32>
    %68 = vector.extract_strided_slice %66 {offsets = [0, 32], sizes = [32, 32], strides = [1, 1]} : vector<32x96xf32> to vector<32x32xf32>
    %69 = vector.extract_strided_slice %66 {offsets = [0, 64], sizes = [32, 32], strides = [1, 1]} : vector<32x96xf32> to vector<32x32xf32>
    %70 = tpu.concatenate %68, %68, %68, %68 in 0 : vector<32x32xf32>, vector<32x32xf32>, vector<32x32xf32>, vector<32x32xf32> -> vector<128x32xf32>
    %71 = arith.mulf %70, %11 : vector<128x32xf32>
    %72 = tpu.concatenate %69, %69, %69, %69 in 0 : vector<32x32xf32>, vector<32x32xf32>, vector<32x32xf32>, vector<32x32xf32> -> vector<128x32xf32>
    %73 = arith.mulf %72, %11 : vector<128x32xf32>
    "tpu.trace_start"() <{level = 10 : i32, message = "qd,kd->qk"}> : () -> ()
    %cst_43 = arith.constant dense<0.000000e+00> : vector<32x128xf32>
    %74 = tpu.matmul %67, %71, %cst_43 {dimension_numbers = #tpu.dot_dimension_numbers<[1], [1], [0], [0], [0, 0, 1, 0], [], []>} : vector<32x32xf32>, vector<128x32xf32>, vector<32x128xf32> -> vector<32x128xf32>
    "tpu.trace_stop"() : () -> ()
    %75 = arith.addf %74, %9 : vector<32x128xf32>
    %cst_44 = arith.constant dense<0xFF800000> : vector<32xf32>
    %76 = vector.multi_reduction <maximumf>, %75, %cst_44 [1] : vector<32x128xf32> to vector<32xf32>
    %77 = vector.shape_cast %76 : vector<32xf32> to vector<32x1xf32>
    %78 = vector.broadcast %77 : vector<32x1xf32> to vector<32x128xf32>
    %79 = arith.subf %75, %78 : vector<32x128xf32>
    %80 = math.exp %79 : vector<32x128xf32>
    %cst_45 = arith.constant dense<0.000000e+00> : vector<32x128xf32>
    %81 = tpu.matmul %80, %10, %cst_45 {dimension_numbers = #tpu.dot_dimension_numbers<[1], [0], [0], [1], [0, 0, 1, 1], [], []>} : vector<32x128xf32>, vector<128x128xf32>, vector<32x128xf32> -> vector<32x128xf32>
    %82 = tpu.reciprocal %81 {approx = true} : vector<32x128xf32> -> vector<32x128xf32>
    %83 = arith.mulf %80, %82 : vector<32x128xf32>
    %cst_46 = arith.constant dense<0.000000e+00> : vector<32x32xf32>
    %84 = tpu.matmul %83, %73, %cst_46 {dimension_numbers = #tpu.dot_dimension_numbers<[1], [0], [0], [1], [0, 0, 1, 1], [], []>} : vector<32x128xf32>, vector<128x32xf32>, vector<32x32xf32> -> vector<32x32xf32>
    %85 = arith.addf %0, %84 : vector<32x32xf32>
    %cst_47 = arith.constant dense<0.000000e+00> : vector<32xf32>
    %86 = vector.multi_reduction <add>, %85, %cst_47 [1] : vector<32x32xf32> to vector<32xf32>
    %87 = vector.shape_cast %86 : vector<32xf32> to vector<32x1xf32>
    %cst_48 = arith.constant 3.200000e+01 : f32
    %88 = vector.broadcast %cst_48 : f32 to vector<32x1xf32>
    %89 = arith.divf %87, %88 : vector<32x1xf32>
    %90 = vector.broadcast %89 : vector<32x1xf32> to vector<32x32xf32>
    %91 = arith.subf %85, %90 : vector<32x32xf32>
    %92 = arith.mulf %91, %91 : vector<32x32xf32>
    %cst_49 = arith.constant dense<0.000000e+00> : vector<32xf32>
    %93 = vector.multi_reduction <add>, %92, %cst_49 [1] : vector<32x32xf32> to vector<32xf32>
    %94 = vector.shape_cast %93 : vector<32xf32> to vector<32x1xf32>
    %cst_50 = arith.constant 3.200000e+01 : f32
    %95 = vector.broadcast %cst_50 : f32 to vector<32x1xf32>
    %96 = arith.divf %94, %95 : vector<32x1xf32>
    %97 = vector.broadcast %89 : vector<32x1xf32> to vector<32x32xf32>
    %98 = arith.subf %85, %97 : vector<32x32xf32>
    %cst_51 = arith.constant 9.99999997E-7 : f32
    %99 = vector.broadcast %cst_51 : f32 to vector<32x1xf32>
    %100 = arith.addf %96, %99 : vector<32x1xf32>
    %101 = math.rsqrt %100 : vector<32x1xf32>
    %102 = vector.broadcast %101 : vector<32x1xf32> to vector<32x32xf32>
    %103 = arith.mulf %98, %102 : vector<32x32xf32>
    %104 = vector.broadcast %4 : vector<1x32xf32> to vector<32x32xf32>
    %105 = arith.mulf %103, %104 : vector<32x32xf32>
    %106 = vector.broadcast %5 : vector<1x32xf32> to vector<32x32xf32>
    %107 = arith.addf %105, %106 : vector<32x32xf32>
    %c0_52 = arith.constant 0 : index
    %c0_53 = arith.constant 0 : index
    %c0_54 = arith.constant 0 : index
    %108 = vector.load %arg4[%c0_52, %c0_53, %c0_54] : memref<2x32x32xf32, #tpu.memory_space<vmem>>, vector<1x32x32xf32>
    %109 = vector.shape_cast %108 : vector<1x32x32xf32> to vector<32x32xf32>
    %cst_55 = arith.constant dense<0.000000e+00> : vector<32x32xf32>
    %110 = tpu.matmul %107, %109, %cst_55 {dimension_numbers = #tpu.dot_dimension_numbers<[1], [0], [0], [1], [0, 0, 1, 1], [], []>} : vector<32x32xf32>, vector<32x32xf32>, vector<32x32xf32> -> vector<32x32xf32>
    %111 = vector.broadcast %6 : vector<1x32xf32> to vector<32x32xf32>
    %112 = arith.addf %110, %111 : vector<32x32xf32>
    %cst_56 = arith.constant 5.000000e-01 : f32
    %113 = vector.broadcast %cst_56 : f32 to vector<32x32xf32>
    %114 = arith.mulf %113, %112 : vector<32x32xf32>
    %cst_57 = arith.constant 4.471500e-02 : f32
    %115 = vector.broadcast %cst_57 : f32 to vector<32x32xf32>
    %116 = arith.mulf %115, %112 : vector<32x32xf32>
    %117 = arith.mulf %116, %112 : vector<32x32xf32>
    %118 = arith.mulf %117, %112 : vector<32x32xf32>
    %119 = arith.addf %112, %118 : vector<32x32xf32>
    %cst_58 = arith.constant 0.797884583 : f32
    %120 = vector.broadcast %cst_58 : f32 to vector<32x32xf32>
    %121 = arith.mulf %120, %119 : vector<32x32xf32>
    %122 = math.tanh %121 : vector<32x32xf32>
    %cst_59 = arith.constant 1.000000e+00 : f32
    %123 = vector.broadcast %cst_59 : f32 to vector<32x32xf32>
    %124 = arith.addf %123, %122 : vector<32x32xf32>
    %125 = arith.mulf %114, %124 : vector<32x32xf32>
    %c1_60 = arith.constant 1 : index
    %c0_61 = arith.constant 0 : index
    %c0_62 = arith.constant 0 : index
    %126 = vector.load %arg4[%c1_60, %c0_61, %c0_62] : memref<2x32x32xf32, #tpu.memory_space<vmem>>, vector<1x32x32xf32>
    %127 = vector.shape_cast %126 : vector<1x32x32xf32> to vector<32x32xf32>
    %cst_63 = arith.constant dense<0.000000e+00> : vector<32x32xf32>
    %128 = tpu.matmul %125, %127, %cst_63 {dimension_numbers = #tpu.dot_dimension_numbers<[1], [0], [0], [1], [0, 0, 1, 1], [], []>} : vector<32x32xf32>, vector<32x32xf32>, vector<32x32xf32> -> vector<32x32xf32>
    %129 = vector.broadcast %7 : vector<1x32xf32> to vector<32x32xf32>
    %130 = arith.addf %128, %129 : vector<32x32xf32>
    %131 = arith.addf %130, %85 : vector<32x32xf32>
    %c0_64 = arith.constant 0 : index
    %c0_65 = arith.constant 0 : index
    %132 = vector.load %arg7[%c0_64, %c0_65] : memref<32x32xf32, #tpu.memory_space<vmem>>, vector<32x32xf32>
    tpu.vector_store %arg7[%c0_64, %c0_65], %131 {strides = array<i32>} : memref<32x32xf32, #tpu.memory_space<vmem>>, vector<32x32xf32>,
    return
  }
  func.func @transform_0(%arg0: i32) -> (i32, i32) {
    %c0_i32 = arith.constant 0 : i32
    %c0_i32_0 = arith.constant 0 : i32
    %c0_i32_1 = arith.constant 0 : i32
    return %c0_i32, %c0_i32_0 : i32, i32
  }
  func.func @transform_1(%arg0: i32) -> (i32, i32, i32) {
    %c0_i32 = arith.constant 0 : i32
    %c0_i32_0 = arith.constant 0 : i32
    %c0_i32_1 = arith.constant 0 : i32
    %c0_i32_2 = arith.constant 0 : i32
    return %c0_i32, %c0_i32_0, %c0_i32_1 : i32, i32, i32
  }
  func.func @transform_2(%arg0: i32) -> (i32, i32, i32) {
    %c0_i32 = arith.constant 0 : i32
    %c0_i32_0 = arith.constant 0 : i32
    %c0_i32_1 = arith.constant 0 : i32
    %c0_i32_2 = arith.constant 0 : i32
    return %c0_i32, %c0_i32_0, %c0_i32_1 : i32, i32, i32
  }
  func.func @transform_3(%arg0: i32) -> (i32, i32, i32) {
    %c0_i32 = arith.constant 0 : i32
    %c0_i32_0 = arith.constant 0 : i32
    %c0_i32_1 = arith.constant 0 : i32
    %c0_i32_2 = arith.constant 0 : i32
    return %c0_i32, %c0_i32_0, %c0_i32_1 : i32, i32, i32
  }
  func.func @transform_4(%arg0: i32) -> (i32, i32) {
    %c0_i32 = arith.constant 0 : i32
    %c0_i32_0 = arith.constant 0 : i32
    %c0_i32_1 = arith.constant 0 : i32
    return %c0_i32, %c0_i32_0 : i32, i32
  }
  func.func @transform_5(%arg0: i32) -> (i32, i32) {
    %c0_i32 = arith.constant 0 : i32
    %c0_i32_0 = arith.constant 0 : i32
    %c0_i32_1 = arith.constant 0 : i32
    return %c0_i32, %c0_i32_0 : i32, i32
  }
  func.func @transform_6(%arg0: i32) -> (i32, i32) {
    %c0_i32 = arith.constant 0 : i32
    %c0_i32_0 = arith.constant 0 : i32
    %c0_i32_1 = arith.constant 0 : i32
    return %c0_i32, %c0_i32_0 : i32, i32
  }
}

</mosaic_0001>

<bundles_post_ra>
// kernel: multi_conv_attention.1
= control target key start
LH: loop header
LB: loop body
LE: loop exit
PB: predicated region body
PF: predicated region fallthrough
CT: control target
= control target key end

     0   :  { %11 = vsyncpa [#allocation3], 0  ;;  %s3526_s0 = inlined_call_operand.hbm [shape: f32[32,32], index: 0, kind: input, shape index: {}]   ;;  %s3527_s1 = inlined_call_operand.hbm [shape: f32[5,32,32], index: 1, kind: input, shape index: {}]   ;;  %s3528_s2 = inlined_call_operand.hbm [shape: f32[5,32,96], index: 2, kind: input, shape index: {}]   ;;  %s3529_s3 = inlined_call_operand.hbm [shape: f32[2,32,32], index: 3, kind: input, shape index: {}]   ;;  %s3530_s4 = inlined_call_operand.vmem [shape: f32[8,96], index: 4, kind: input, shape index: {}]   ;;  %s3531_s5 = inlined_call_operand.hbm [shape: f32[288,128], index: 5, kind: input, shape index: {}]   ;;  %s3532_s6 = inlined_call_operand.hbm [shape: f32[32,32], index: 6, kind: output, shape index: {}]  }
   0x1   :  { %12 = vsyncpa [#allocation6], 0 }
   0x2   :  { %13 = vsyncpa [#allocation9], 0 }
   0x3   :  { %14 = vsyncpa [#allocation4], 0  ;;  %s3044_s21 = smov [#allocation5]   ;;  %s3045_s23 = smov [#allocation8]  }
   0x4   :  { %s32_s22 = sshll.u32 %s3044_s21, 4  ;;  %s56_s24 = sshll.u32 %s3045_s23, 4  ;;  %s33_s22 = int_to_ptr.vmem [resolvable:$true] %s32_s22  ;;  %s3090_s24 = int_to_ptr.vmem [resolvable:$true] %s56_s24 }
   0x5   :  { %s2904_s27 = scalar_lea.hbm %s3527_s1, 2560 }
   0x6   :  { %p2905_p0 = scmp.ne.s32.totalorder %s3527_s1, %s2904_s27  ;;  %p2908_p1 = scmp.lt.u32.totalorder %s2904_s27, %s3527_s1 }
   0x8   :  { %p2910_p2 = pnand %p2908_p1, %p2905_p0 }
   0xa   :  { %2913 = shalt.err (!%p2910_p2)
}
   0xb   :  { %s2914_s8 = scalar_lea.vmem %s33_s22, 2560  ;;  %p2919_p4 = scmp.lt.s32.totalorder %s33_s22, %s33_s22 }
   0xc   :  { %p2915_p3 = scmp.ne.s32.totalorder %s33_s22, %s2914_s8  ;;  %p2920_p5 = scmp.lt.s32.totalorder %s2914_s8, %s2914_s8 }
   0xe   :  { %p2921_p6 = por %p2920_p5, %p2919_p4 }
  0x10   :  { %p2922_p7 = pnand %p2921_p6, %p2915_p3 }
  0x12   :  { %2925 = shalt.err (!%p2922_p7)
}
  0x13   :  { %s3046_s9 = smov 128   ;;  %s3047_s10 = smov 8  }
  0x14   :  { %38 = dma.hbm_to_vmem [thread:$0]  %s3527_s1, 2560, %s33_s22, [#allocation6], %s3046_s9, %s3046_s9, %s3047_s10  }
  0x15   :  { %s2926_s15 = scalar_lea.hbm %s3529_s3, 1024 }
  0x16   :  { %p2927_p8 = scmp.ne.s32.totalorder %s3529_s3, %s2926_s15  ;;  %p2930_p9 = scmp.lt.u32.totalorder %s2926_s15, %s3529_s3 }
  0x18   :  { %p2932_p10 = pnand %p2930_p9, %p2927_p8 }
  0x1a   :  { %2935 = shalt.err (!%p2932_p10)
}
  0x1b   :  { %s2936_s20 = scalar_lea.vmem %s3090_s24, 1024  ;;  %p2941_p12 = scmp.lt.s32.totalorder %s3090_s24, %s3090_s24 }
  0x1c   :  { %p2937_p11 = scmp.ne.s32.totalorder %s3090_s24, %s2936_s20  ;;  %p2942_p13 = scmp.lt.s32.totalorder %s2936_s20, %s2936_s20 }
  0x1e   :  { %p2943_p0 = por %p2942_p13, %p2941_p12 }
  0x20   :  { %p2944_p1 = pnand %p2943_p0, %p2937_p11 }
  0x22   :  { %2947 = shalt.err (!%p2944_p1)
}
  0x23   :  { %62 = dma.hbm_to_vmem [thread:$0]  %s3529_s3, 1024, %s3090_s24, [#allocation9], %s3046_s9, %s3046_s9, %s3047_s10  }
  0x24   :  { %s3048_s22 = smov [#allocation2]   ;;  %s3049_s25 = smov [#allocation7]  }
  0x25   :  { %s20_s23 = sshll.u32 %s3048_s22, 4  ;;  %s44_s26 = sshll.u32 %s3049_s25, 4  ;;  %s21_s23 = int_to_ptr.vmem [resolvable:$true] %s20_s23  ;;  %s3127_s26 = int_to_ptr.vmem [resolvable:$true] %s44_s26 }
  0x26   :  { %s2948_s29 = scalar_lea.hbm %s3526_s0, 512 }
  0x27   :  { %p2949_p2 = scmp.ne.s32.totalorder %s3526_s0, %s2948_s29  ;;  %p2952_p3 = scmp.lt.u32.totalorder %s2948_s29, %s3526_s0 }
  0x29   :  { %p2954_p4 = pnand %p2952_p3, %p2949_p2 }
  0x2b   :  { %2957 = shalt.err (!%p2954_p4)
}
  0x2c   :  { %s2958_s3 = scalar_lea.vmem %s21_s23, 512  ;;  %p2963_p6 = scmp.lt.s32.totalorder %s21_s23, %s21_s23 }
  0x2d   :  { %p2959_p5 = scmp.ne.s32.totalorder %s21_s23, %s2958_s3  ;;  %p2964_p7 = scmp.lt.s32.totalorder %s2958_s3, %s2958_s3 }
  0x2f   :  { %p2965_p8 = por %p2964_p7, %p2963_p6 }
  0x31   :  { %p2966_p9 = pnand %p2965_p8, %p2959_p5 }
  0x33   :  { %2969 = shalt.err (!%p2966_p9)
}
  0x34   :  { %26 = dma.hbm_to_vmem [thread:$0]  %s3526_s0, 512, %s21_s23, [#allocation3], %s3046_s9, %s3046_s9, %s3047_s10  }
  0x35   :  { %s2970_s15 = scalar_lea.hbm %s3528_s2, 2560 }
  0x36   :  { %p2971_p10 = scmp.ne.s32.totalorder %s3528_s2, %s2970_s15  ;;  %p2974_p11 = scmp.lt.u32.totalorder %s2970_s15, %s3528_s2 }
  0x38   :  { %p2976_p12 = pnand %p2974_p11, %p2971_p10 }
  0x3a   :  { %2979 = shalt.err (!%p2976_p12)
}
  0x3b   :  { %s2980_s20 = scalar_lea.vmem %s3127_s26, 2560  ;;  %p2985_p0 = scmp.lt.s32.totalorder %s3127_s26, %s3127_s26 }
  0x3c   :  { %p2981_p13 = scmp.ne.s32.totalorder %s3127_s26, %s2980_s20  ;;  %p2986_p1 = scmp.lt.s32.totalorder %s2980_s20, %s2980_s20 }
  0x3e   :  { %p2987_p2 = por %p2986_p1, %p2985_p0 }
  0x40   :  { %p2988_p3 = pnand %p2987_p2, %p2981_p13 }
  0x42   :  { %2991 = shalt.err (!%p2988_p3)
}
  0x43   :  { %50 = dma.hbm_to_vmem [thread:$0]  %s3528_s2, 2560, %s3127_s26, [#allocation6], %s3046_s9, %s3046_s9, %s3047_s10  }
  0x44   :  { %s3050_s21 = smov [#allocation10]   ;;  %s2992_s27 = scalar_lea.hbm %s3531_s5, 4608 }
  0x45   :  { %s70_s22 = sshll.u32 %s3050_s21, 4  ;;  %p2993_p4 = scmp.ne.s32.totalorder %s3531_s5, %s2992_s27  ;;  %s71_s22 = int_to_ptr.vmem [resolvable:$true] %s70_s22 }
  0x46   :  { %p2996_p5 = scmp.lt.u32.totalorder %s2992_s27, %s3531_s5 }
  0x48   :  { %p2998_p6 = pnand %p2996_p5, %p2993_p4 }
  0x4a   :  { %3001 = shalt.err (!%p2998_p6)
}
  0x4b   :  { %s3002_s8 = scalar_lea.vmem %s71_s22, 4608  ;;  %p3007_p8 = scmp.lt.s32.totalorder %s71_s22, %s71_s22 }
  0x4c   :  { %p3003_p7 = scmp.ne.s32.totalorder %s71_s22, %s3002_s8  ;;  %p3008_p9 = scmp.lt.s32.totalorder %s3002_s8, %s3002_s8 }
  0x4e   :  { %p3009_p10 = por %p3008_p9, %p3007_p8 }
  0x50   :  { %p3010_p11 = pnand %p3009_p10, %p3003_p7 }
  0x52   :  { %3013 = shalt.err (!%p3010_p11)
}
  0x53   :  { %76 = dma.hbm_to_vmem [thread:$0]  %s3531_s5, 4608, %s71_s22, [#allocation9], %s3046_s9, %s3046_s9, %s3047_s10  }
  0x54   :  { %3036 = dma.done.wait [#allocation3], 512  }
  0x55   :  { %3037 = vsyncadd [#allocation3], 4294966784 }
  0x56   :  { %3038 = dma.done.wait [#allocation6], 5120  }
  0x57   :  { %3039 = vsyncadd [#allocation6], 4294962176 }
  0x58   :  { %3040 = dma.done.wait [#allocation9], 5632  }
  0x59   :  { %3041 = vsyncadd [#allocation9], 4294961664  ;;  %vm133_vm0 = vcmask 261120   ;;  %v92_v0 = vld [vmem:[#allocation2] sm:$0xff]  ;;  %v94_v1 = vld [vmem:[#allocation2 + $0x10] sm:$0xff]  ;;  %v187_v38 = vlaneseq  ;;  %s3051_s3 = smov 32  }
  0x5a   :  { %v93_v2 = vld [vmem:[#allocation2 + $0x8] sm:$0xff]  ;;  %v134_v3 = vsel %vm133_vm0, %v92_v0, 0.0  ;;  %v140_v4 = vsel %vm133_vm0, %v94_v1, 0.0  ;;  %v95_v5 = vld [vmem:[#allocation2 + $0x18] sm:$0xff]  ;;  %v208_v28 = vld [vmem:[#allocation5] sm:$0xff]  ;;  %s3052_s24 = smov 96  }
  0x5b   :  { %135 = vadd.xlane.f32.xlu0 %v134_v3  ;;  %141 = vadd.xlane.f32.xlu1 %v140_v4  ;;  %v137_v6 = vsel %vm133_vm0, %v93_v2, 0.0  ;;  %v143_v7 = vsel %vm133_vm0, %v95_v5, 0.0  ;;  %v309_v29 = vld [vmem:[#allocation7] sm:$0xff]  ;;  %v310_v30 = vld [vmem:[#allocation7 + $0x8] sm:$0xff]  ;;  %v311_v31 = vld [vmem:[#allocation7 + $0x10] sm:$0xff]  ;;  %v3188_v45 = vshrl.u32 %v187_v38, 7 }
  0x5c   :  { %2288 = vmatprep.mubr.msk.f32.mxu0 %vm133_vm0, %v208_v28  ;;  %v2556_v32 = vpack.c.bf16 %v310_v30, %v309_v29  ;;  %v312_v33 = vld [vmem:[#allocation7 + $0x18] sm:$0xff]  ;;  %v3194_v50 = vld [vmem:[%s3530_s4] sm:$0xff]  ;;  %v3232_v28 = vld [vmem:[#allocation10 + $0xb0] sm:$0xff]  ;;  %s3053_s12 = smov 64  }
  0x5d   :  { %v2560_v34 = vpack.c.bf16 %v312_v33, %v311_v31  ;;  %v189_v49 = vsub.s32 0, %v3188_v45  ;;  %v197_v53 = vsub.s32 1, %v3188_v45  ;;  %v3236_v29 = vld [vmem:[#allocation10 + $0xc0] sm:$0xff]  ;;  %v3240_v30 = vld [vmem:[#allocation10 + $0xb8] sm:$0xff]  ;;  %v3244_v31 = vld [vmem:[#allocation10 + $0xd0] sm:$0xff] }
  0x5e   :  { %2557 = vmatprep.subr.bf16.mxu1 %v2556_v32  ;;  %v3252_v33 = vld [vmem:[#allocation10 + $0xe0] sm:$0xff]  ;;  %v3272_v38 = vld [vmem:[#allocation10 + $0xf8] sm:$0xff]  ;;  %vm3344_vm1 = vmpackc.low %vm133_vm0, %vm133_vm0 }
  0x5f   :  { %138 = vadd.xlane.f32.xlu0 %v137_v6  ;;  %144 = vadd.xlane.f32.xlu1 %v143_v7  ;;  %v190_v52 = vrot.slane %v3194_v50, %v189_v49  ;;  %v198_v57 = vrot.slane %v3194_v50, %v197_v53  ;;  %v611_v49 = vld [vmem:[#allocation7 + $0x28] sm:$0xff] }
  0x60   :  { %2559 = vmatpush3.bf16.msra.mxu1 %v2556_v32  ;;  %v3248_v32 = vld [vmem:[#allocation10 + $0xc8] sm:$0xff] }
  0x61   :  { %2561 = vmatprep.subr.bf16.mxu1 %v2560_v34 }
  0x64   :  { %2563 = vmatpush3.bf16.msra.mxu1 %v2560_v34  ;;  %v3256_v34 = vld [vmem:[#allocation10 + $0xd8] sm:$0xff] }
  0xe8   :  { %v136_v8 = vpop.xlane.xlu0 %135  ;;  %v142_v9 = vpop.xlane.xlu1 %141 }
  0xe9   :  { %v147_v10 = vmul.f32 0.03125, %v136_v8  ;;  %v149_v11 = vmul.f32 0.03125, %v142_v9  ;;  %v209_v8 = vld [vmem:[#allocation5 + $0x8] sm:$0xff]  ;;  %v210_v9 = vld [vmem:[#allocation5 + $0x10] sm:$0xff] }
  0xeb   :  { %v151_v12 = vsub.f32 %v92_v0, %v147_v10  ;;  %v153_v13 = vsub.f32 %v94_v1, %v149_v11  ;;  %v211_v10 = vld [vmem:[#allocation5 + $0x18] sm:$0xff]  ;;  %v508_v11 = vld [vmem:[#allocation5 + $0x20] sm:$0xff] }
  0xec   :  { %v139_v14 = vpop.xlane.xlu0 %138  ;;  %v145_v15 = vpop.xlane.xlu1 %144 }
  0xed   :  { %v148_v16 = vmul.f32 0.03125, %v139_v14  ;;  %v150_v17 = vmul.f32 0.03125, %v145_v15  ;;  %v155_v18 = vmul.f32 %v151_v12, %v151_v12  ;;  %v157_v19 = vmul.f32 %v153_v13, %v153_v13  ;;  %v511_v14 = vld [vmem:[#allocation5 + $0x38] sm:$0xff]  ;;  %v716_v15 = vld [vmem:[#allocation5 + $0x60] sm:$0xff] }
  0xef   :  { %v152_v20 = vsub.f32 %v93_v2, %v148_v16  ;;  %v154_v21 = vsub.f32 %v95_v5, %v150_v17  ;;  %v159_v22 = vsel %vm133_vm0, %v155_v18, 0.0  ;;  %v165_v23 = vsel %vm133_vm0, %v157_v19, 0.0  ;;  %v717_v16 = vld [vmem:[#allocation5 + $0x68] sm:$0xff]  ;;  %v718_v17 = vld [vmem:[#allocation5 + $0x70] sm:$0xff]  ;;  %v719_v18 = vld [vmem:[#allocation5 + $0x78] sm:$0xff] }
  0xf0   :  { %160 = vadd.xlane.f32.xlu0 %v159_v22  ;;  %v924_v19 = vld [vmem:[#allocation5 + $0x80] sm:$0xff]  ;;  %v927_v22 = vld [vmem:[#allocation5 + $0x98] sm:$0xff] }
  0xf1   :  { %v156_v24 = vmul.f32 %v152_v20, %v152_v20  ;;  %v158_v25 = vmul.f32 %v154_v21, %v154_v21 }
  0xf3   :  { %v162_v26 = vsel %vm133_vm0, %v156_v24, 0.0  ;;  %v168_v27 = vsel %vm133_vm0, %v158_v25, 0.0  ;;  %v205_v24 = vld [vmem:[#allocation7 + $0x48] sm:$0xff] }
  0xf4   :  { %166 = vadd.xlane.f32.xlu0 %v165_v23  ;;  %163 = vadd.xlane.f32.xlu1 %v162_v26  ;;  %v204_v23 = vld [vmem:[#allocation7 + $0x40] sm:$0xff]  ;;  %v3226_v26 = vld [vmem:[#allocation10 + $0xa8] sm:$0xff] }
  0xf5   :  { %v2564_v25 = vpack.c.bf16 %v205_v24, %v204_v23 }
  0xf7   :  { %2565 = vmatprep.subr.bf16.mxu1 %v2564_v25 }
  0xf8   :  { %169 = vadd.xlane.f32.xlu1 %v168_v27  ;;  %v3230_v27 = vld [vmem:[#allocation10 + $0xa0] sm:$0xff] }
 0x109   :  { %1157 = vrot.lane.b32.xlu1 %v3226_v26, %s3051_s3 }
 0x10a   :  { %1155 = vrot.lane.b32.xlu0 %v3230_v27, %s3051_s3 }
 0x10d   :  { %1159 = vrot.lane.b32.xlu1 %v3232_v28, %s3051_s3 }
 0x10e   :  { %1163 = vrot.lane.b32.xlu0 %v3236_v29, %s3051_s3 }
 0x111   :  { %1161 = vrot.lane.b32.xlu1 %v3240_v30, %s3051_s3 }
 0x112   :  { %1167 = vrot.lane.b32.xlu0 %v3244_v31, %s3051_s3 }
 0x115   :  { %1165 = vrot.lane.b32.xlu1 %v3248_v32, %s3051_s3 }
 0x116   :  { %1171 = vrot.lane.b32.xlu0 %v3252_v33, %s3051_s3 }
 0x119   :  { %1169 = vrot.lane.b32.xlu1 %v3256_v34, %s3051_s3 }
 0x17d   :  { %v161_v35 = vpop.xlane.xlu0 %160 }
 0x17e   :  { %v171_v36 = vmul.f32 0.03125, %v161_v35  ;;  %v3260_v35 = vld [vmem:[#allocation10 + $0xf0] sm:$0xff] }
 0x17f   :  { %1175 = vrot.lane.b32.xlu0 %v3260_v35, %s3051_s3 }
 0x180   :  { %v175_v37 = vadd.f32 1e-06, %v171_v36  ;;  %v3264_v36 = vld [vmem:[#allocation10 + $0xe8] sm:$0xff] }
 0x181   :  { %v164_v39 = vpop.xlane.xlu1 %163  ;;  %v167_v40 = vpop.xlane.xlu0 %166  ;;  %1173 = vrot.lane.b32.xlu1 %v3264_v36, %s3051_s3 }
 0x182   :  { %2859 = vrsqrt.f32 %v175_v37  ;;  %v172_v41 = vmul.f32 0.03125, %v164_v39  ;;  %v173_v42 = vmul.f32 0.03125, %v167_v40  ;;  %v3268_v37 = vld [vmem:[#allocation10 + $0x100] sm:$0xff]  ;;  %v3276_v39 = vld [vmem:[#allocation10 + $0x110] sm:$0xff]  ;;  %v3280_v40 = vld [vmem:[#allocation10 + $0x108] sm:$0xff] }
 0x183   :  { %1179 = vrot.lane.b32.xlu0 %v3268_v37, %s3051_s3 }
 0x184   :  { %v176_v43 = vadd.f32 1e-06, %v172_v41  ;;  %v177_v44 = vadd.f32 1e-06, %v173_v42  ;;  %v3286_v41 = vld [vmem:[#allocation10 + $0x118] sm:$0xff]  ;;  %v206_v42 = vld [vmem:[#allocation7 + $0x50] sm:$0xff] }
 0x185   :  { %v170_v46 = vpop.xlane.xlu1 %169  ;;  %1177 = vrot.lane.b32.xlu1 %v3272_v38, %s3051_s3 }
 0x186   :  { %2861 = vrsqrt.f32 %v176_v43  ;;  %v174_v47 = vmul.f32 0.03125, %v170_v46  ;;  %v207_v43 = vld [vmem:[#allocation7 + $0x58] sm:$0xff] }
 0x187   :  { %2863 = vrsqrt.f32 %v177_v44  ;;  %1183 = vrot.lane.b32.xlu0 %v3276_v39, %s3051_s3 }
 0x188   :  { %v178_v48 = vadd.f32 1e-06, %v174_v47  ;;  %v2568_v47 = vpack.c.bf16 %v207_v43, %v206_v42 }
 0x189   :  { %1181 = vrot.lane.b32.xlu1 %v3280_v40, %s3051_s3 }
 0x18a   :  { %2865 = vrsqrt.f32 %v178_v48  ;;  %v610_v48 = vld [vmem:[#allocation7 + $0x20] sm:$0xff] }
 0x18b   :  { %v2580_v53 = vpack.c.bf16 %v611_v49, %v610_v48 }
 0x18c   :  { %v2860_v51 = vpop.eup %2859 }
 0x18d   :  { %v183_v54 = vmul.f32 %v2860_v51, %v151_v12  ;;  %v509_v12 = vld [vmem:[#allocation5 + $0x28] sm:$0xff]  ;;  %1185 = vrot.lane.b32.xlu1 %v3286_v41, %s3051_s3 }
 0x18f   :  { %v191_v58 = vmul.f32 %v190_v52, %v183_v54  ;;  %v612_v54 = vld [vmem:[#allocation7 + $0x30] sm:$0xff] }
 0x190   :  { %v2862_v55 = vpop.eup %2861 }
 0x191   :  { %v2864_v56 = vpop.eup %2863  ;;  %v184_v59 = vmul.f32 %v2862_v55, %v152_v20  ;;  %v3199_v63 = vadd.f32 %v198_v57, %v191_v58  ;;  %v925_v20 = vld [vmem:[#allocation5 + $0x88] sm:$0xff]  ;;  %v613_v55 = vld [vmem:[#allocation7 + $0x38] sm:$0xff] }
 0x192   :  { %v185_v60 = vmul.f32 %v2864_v56, %v153_v13  ;;  %v510_v13 = vld [vmem:[#allocation5 + $0x30] sm:$0xff] }
 0x193   :  { %v192_v61 = vmul.f32 %v190_v52, %v184_v59  ;;  %v818_v59 = vld [vmem:[#allocation7 + $0x60] sm:$0xff] }
 0x194   :  { %v2866_v62 = vpop.eup %2865  ;;  %v193_v1 = vmul.f32 %v190_v52, %v185_v60  ;;  %v819_v60 = vld [vmem:[#allocation7 + $0x68] sm:$0xff] }
 0x195   :  { %v3201_v0 = vadd.f32 %v198_v57, %v192_v61  ;;  %v186_v2 = vmul.f32 %v2866_v62, %v154_v21  ;;  %v926_v21 = vld [vmem:[#allocation5 + $0x90] sm:$0xff]  ;;  %v2596_v62 = vpack.c.bf16 %v819_v60, %v818_v59 }
 0x196   :  { %v3205_v5 = vadd.f32 %v198_v57, %v193_v1 }
 0x197   :  { %v2548_v3 = vpack.c.bf16 %v3201_v0, %v3199_v63  ;;  %v194_v4 = vmul.f32 %v190_v52, %v186_v2  ;;  %v820_v2 = vld [vmem:[#allocation7 + $0x70] sm:$0xff] }
 0x199   :  { %v3207_v6 = vadd.f32 %v198_v57, %v194_v4  ;;  %2549 = vmatprep.subr.bf16.mxu0 %v2548_v3  ;;  %v2584_v57 = vpack.c.bf16 %v613_v55, %v612_v54 }
 0x19a   :  { %2551 = vmatpush3.bf16.msra.mxu0 %v2548_v3 }
 0x19b   :  { %v2552_v7 = vpack.c.bf16 %v3207_v6, %v3205_v5 }
 0x19d   :  { %2553 = vmatprep.subr.bf16.mxu0 %v2552_v7 }
 0x19e   :  { %2555 = vmatpush3.bf16.msra.mxu0 %v2552_v7 }
 0x19f   :  { %2573 = vmatprep.subr.bf16.mxu0 %v2548_v3 }
 0x1a1   :  { %2289 = vmatmul.mubr.msk.f32.vlgmr.msra.gmra.mrb[0].mxu0 %vm133_vm0, %v209_v8  ;;  %v1027_v8 = vld [vmem:[#allocation7 + $0x88] sm:$0xff] }
 0x1a2   :  { %2575 = vmatpush3.bf16.msra.mxu0 %v2548_v3  ;;  %2291 = vmatprep.mubr.msk.f32.mxu0 %vm133_vm0, %v210_v9 }
 0x1a3   :  { %2577 = vmatprep.subr.bf16.mxu0 %v2552_v7 }
 0x1a5   :  { %2292 = vmatmul.mubr.msk.f32.gmra.mrb[2].mxu0 %vm133_vm0, %v211_v10 }
 0x1a6   :  { %2579 = vmatpush3.bf16.msra.mxu0 %v2552_v7  ;;  %2330 = vmatprep.mubr.msk.f32.mxu0 %vm133_vm0, %v508_v11  ;;  %v1028_v11 = vld [vmem:[#allocation7 + $0x90] sm:$0xff] }
 0x1a7   :  { %2589 = vmatprep.subr.bf16.mxu0 %v2548_v3 }
 0x1a9   :  { %2331 = vmatmul.mubr.msk.f32.vlgmr.msra.gmra.mrb[4].mxu0 %vm133_vm0, %v509_v12 }
 0x1aa   :  { %2591 = vmatpush3.bf16.msra.mxu0 %v2548_v3  ;;  %2333 = vmatprep.mubr.msk.f32.mxu0 %vm133_vm0, %v510_v13 }
 0x1ab   :  { %2593 = vmatprep.subr.bf16.mxu0 %v2552_v7 }
 0x1ad   :  { %2334 = vmatmul.mubr.msk.f32.gmra.mrb[6].mxu0 %vm133_vm0, %v511_v14 }
 0x1ae   :  { %2595 = vmatpush3.bf16.msra.mxu0 %v2552_v7  ;;  %2358 = vmatprep.mubr.msk.f32.mxu0 %vm133_vm0, %v716_v15 }
 0x1af   :  { %2605 = vmatprep.subr.bf16.mxu0 %v2548_v3 }
 0x1b1   :  { %2359 = vmatmul.mubr.msk.f32.vlgmr.msra.gmra.mrb[8].mxu0 %vm133_vm0, %v717_v16 }
 0x1b2   :  { %2607 = vmatpush3.bf16.msra.mxu0 %v2548_v3  ;;  %2361 = vmatprep.mubr.msk.f32.mxu0 %vm133_vm0, %v718_v17  ;;  %v821_v3 = vld [vmem:[#allocation7 + $0x78] sm:$0xff]  ;;  %v1158_v17 = vpop.permute.xlu1 %1157 }
 0x1b3   :  { %2609 = vmatprep.subr.bf16.mxu0 %v2552_v7  ;;  %v2600_v4 = vpack.c.bf16 %v821_v3, %v820_v2 }
 0x1b5   :  { %2362 = vmatmul.mubr.msk.f32.gmra.mrb[10].mxu0 %vm133_vm0, %v719_v18 }
 0x1b6   :  { %2611 = vmatpush3.bf16.msra.mxu0 %v2552_v7  ;;  %2386 = vmatprep.mubr.msk.f32.mxu0 %vm133_vm0, %v924_v19  ;;  %v1026_v7 = vld [vmem:[#allocation7 + $0x80] sm:$0xff]  ;;  %v1160_v18 = vpop.permute.xlu1 %1159 }
 0x1b7   :  { %v2612_v9 = vpack.c.bf16 %v1027_v8, %v1026_v7 }
 0x1b9   :  { %2387 = vmatmul.mubr.msk.f32.vlgmr.msra.gmra.mrb[12].mxu0 %vm133_vm0, %v925_v20  ;;  %v1156_v20 = vpop.permute.xlu0 %1155 }
 0x1ba   :  { %2389 = vmatprep.mubr.msk.f32.mxu0 %vm133_vm0, %v926_v21  ;;  %v1162_v19 = vpop.permute.xlu1 %1161 }
 0x1bd   :  { %2390 = vmatmul.mubr.msk.f32.gmra.mrb[14].mxu0 %vm133_vm0, %v927_v22  ;;  %v1164_v22 = vpop.permute.xlu0 %1163 }
 0x1be   :  { %v1166_v21 = vpop.permute.xlu1 %1165 }
 0x1c1   :  { %v1168_v24 = vpop.permute.xlu0 %1167 }
 0x1c2   :  { %v1170_v23 = vpop.permute.xlu1 %1169 }
 0x1c5   :  { %v1172_v43 = vpop.permute.xlu0 %1171 }
 0x1f3   :  { %v1174_v42 = vpop.permute.xlu1 %1173 }
 0x274   :  { %v2290_v44 = vpop.f32.mrb[0].mxu0 }
 0x275   :  { %v290_v46 = vpop.f32.mrb[1].mxu0 }
 0x276   :  { %2302 = vmatprep.mubr.msk.f32.mxu1 %vm133_vm0, %v290_v46 }
 0x277   :  { %2303 = vmatmul.mubr.msk.f32.vlgmr.msra.gmra.mrb[0].mxu1 %vm133_vm0, %v2290_v44 }
 0x278   :  { %2567 = vmatpush3.bf16.msra.mxu1 %v2564_v25  ;;  %v2293_v51 = vpop.f32.mrb[2].mxu0  ;;  %v1133_v25 = vsub.s32 6, %v3188_v45 }
 0x279   :  { %v300_v52 = vpop.f32.mrb[3].mxu0  ;;  %2569 = vmatprep.subr.bf16.mxu1 %v2568_v47 }
 0x27a   :  { %2305 = vmatprep.mubr.msk.f32.mxu1 %vm133_vm0, %v300_v52  ;;  %v1134_v44 = vrot.slane %v3194_v50, %v1133_v25  ;;  %v1176_v52 = vpop.permute.xlu0 %1175 }
 0x27b   :  { %2306 = vmatmul.mubr.msk.f32.gmra.mrb[2].mxu1 %vm133_vm0, %v2293_v51  ;;  %v1178_v51 = vpop.permute.xlu1 %1177 }
 0x27c   :  { %2571 = vmatpush3.bf16.msra.mxu1 %v2568_v47  ;;  %2316 = vmatprep.mubr.msk.f32.mxu1 %vm133_vm0, %v3199_v63  ;;  %v2332_v56 = vpop.f32.mrb[4].mxu0 }
 0x27d   :  { %2581 = vmatprep.subr.bf16.mxu1 %v2580_v53  ;;  %v590_v58 = vpop.f32.mrb[5].mxu0 }
 0x27e   :  { %v1180_v2 = vpop.permute.xlu0 %1179 }
 0x27f   :  { %2317 = vmatmul.mubr.msk.f32.vlgmr.msra.gmra.mrb[0].mxu1 %vm133_vm0, %v3201_v0 }
 0x280   :  { %2583 = vmatpush3.bf16.msra.mxu1 %v2580_v53  ;;  %2319 = vmatprep.mubr.msk.f32.mxu1 %vm133_vm0, %v3205_v5  ;;  %v2335_v61 = vpop.f32.mrb[6].mxu0 }
 0x281   :  { %2585 = vmatprep.subr.bf16.mxu1 %v2584_v57  ;;  %v600_v1 = vpop.f32.mrb[7].mxu0 }
 0x283   :  { %2320 = vmatmul.mubr.msk.f32.gmra.mrb[2].mxu1 %vm133_vm0, %v3207_v6  ;;  %v1029_v6 = vld [vmem:[#allocation7 + $0x98] sm:$0xff] }
 0x284   :  { %2587 = vmatpush3.bf16.msra.mxu1 %v2584_v57  ;;  %2344 = vmatprep.mubr.msk.f32.mxu1 %vm133_vm0, %v590_v58  ;;  %v2360_v63 = vpop.f32.mrb[8].mxu0  ;;  %v2616_v13 = vpack.c.bf16 %v1029_v6, %v1028_v11 }
 0x285   :  { %2597 = vmatprep.subr.bf16.mxu1 %v2596_v62  ;;  %v798_v0 = vpop.f32.mrb[9].mxu0 }
 0x287   :  { %2345 = vmatmul.mubr.msk.f32.vlgmr.msra.gmra.mrb[0].mxu1 %vm133_vm0, %v2332_v56 }
 0x288   :  { %2599 = vmatpush3.bf16.msra.mxu1 %v2596_v62  ;;  %2347 = vmatprep.mubr.msk.f32.mxu1 %vm133_vm0, %v600_v1  ;;  %v2363_v5 = vpop.f32.mrb[10].mxu0  ;;  %v1182_v1 = vpop.permute.xlu1 %1181 }
 0x289   :  { %2601 = vmatprep.subr.bf16.mxu1 %v2600_v4  ;;  %v808_v10 = vpop.f32.mrb[11].mxu0 }
 0x28b   :  { %2348 = vmatmul.mubr.msk.f32.gmra.mrb[2].mxu1 %vm133_vm0, %v2335_v61 }
 0x28c   :  { %2603 = vmatpush3.bf16.msra.mxu1 %v2600_v4  ;;  %2372 = vmatprep.mubr.msk.f32.mxu1 %vm133_vm0, %v798_v0  ;;  %v2388_v12 = vpop.f32.mrb[12].mxu0 }
 0x28d   :  { %2613 = vmatprep.subr.bf16.mxu1 %v2612_v9  ;;  %v1006_v14 = vpop.f32.mrb[13].mxu0 }
 0x28f   :  { %2373 = vmatmul.mubr.msk.f32.vlgmr.msra.gmra.mrb[0].mxu1 %vm133_vm0, %v2360_v63 }
 0x290   :  { %2615 = vmatpush3.bf16.msra.mxu1 %v2612_v9  ;;  %2375 = vmatprep.mubr.msk.f32.mxu1 %vm133_vm0, %v808_v10  ;;  %v2391_v15 = vpop.f32.mrb[14].mxu0 }
 0x291   :  { %2617 = vmatprep.subr.bf16.mxu1 %v2616_v13  ;;  %v1016_v16 = vpop.f32.mrb[15].mxu0 }
 0x293   :  { %2376 = vmatmul.mubr.msk.f32.gmra.mrb[2].mxu1 %vm133_vm0, %v2363_v5 }
 0x294   :  { %2619 = vmatpush3.bf16.msra.mxu1 %v2616_v13  ;;  %2400 = vmatprep.mubr.msk.f32.mxu1 %vm133_vm0, %v1006_v14  ;;  %v1186_v13 = vpop.permute.xlu1 %1185  ;;  %v1184_v14 = vpop.permute.xlu0 %1183 }
 0x297   :  { %2401 = vmatmul.mubr.msk.f32.vlgmr.msra.gmra.mrb[0].mxu1 %vm133_vm0, %v2388_v12 }
 0x298   :  { %2403 = vmatprep.mubr.msk.f32.mxu1 %vm133_vm0, %v1016_v16 }
 0x29b   :  { %2404 = vmatmul.mubr.msk.f32.gmra.mrb[2].mxu1 %vm133_vm0, %v2391_v15 }
 0x36a   :  { %v2402_v46 = vpop.f32.mrb[0].mxu1 }
 0x36b   :  { %v3316_v47 = vadd.f32 %v2402_v46, %v1134_v44  ;;  %v1108_v48 = vpop.f32.mrb[1].mxu1 }
 0x36c   :  { %v3318_v49 = vadd.f32 %v1134_v44, %v1108_v48 }
 0x36d   :  { %v1204_v53 = vmul.f32 %v1158_v17, %v3316_v47  ;;  %v1208_v60 = vmul.f32 %v1166_v21, %v3316_v47  ;;  %v1212_v63 = vmul.f32 %v1174_v42, %v3316_v47  ;;  %v1216_v5 = vmul.f32 %v1182_v1, %v3316_v47 }
 0x36e   :  { %v2405_v54 = vpop.f32.mrb[2].mxu1  ;;  %2438 = vmatprep.mubr.msk.f32.mxu0 %vm133_vm0, %v3318_v49  ;;  %v1203_v55 = vmul.f32 %v1156_v20, %v3318_v49  ;;  %v1207_v59 = vmul.f32 %v1164_v22, %v3318_v49  ;;  %v1211_v3 = vmul.f32 %v1172_v43, %v3318_v49  ;;  %v1215_v9 = vmul.f32 %v1180_v2, %v3318_v49 }
 0x36f   :  { %v3324_v56 = vadd.f32 %v2405_v54, %v1134_v44  ;;  %v1118_v57 = vpop.f32.mrb[3].mxu1 }
 0x370   :  { %v3326_v50 = vadd.f32 %v1134_v44, %v1118_v57  ;;  %v2779_v58 = vpack.i.bf16 %v1204_v53, %v1203_v55  ;;  %v2789_v0 = vpack.i.bf16 %v1208_v60, %v1207_v59  ;;  %v2799_v11 = vpack.i.bf16 %v1212_v63, %v1211_v3 }
 0x371   :  { %v1206_v61 = vmul.f32 %v1162_v19, %v3324_v56  ;;  %v1210_v8 = vmul.f32 %v1170_v23, %v3324_v56  ;;  %v1214_v12 = vmul.f32 %v1178_v51, %v3324_v56  ;;  %v2809_v15 = vpack.i.bf16 %v1216_v5, %v1215_v9  ;;  %v97_v23 = vld [vmem:[#allocation10] sm:$0xff] }
 0x372   :  { %2780 = vrot.lane.b32.xlu0 %v2779_v58, %s3052_s24  ;;  %v1205_v62 = vmul.f32 %v1160_v18, %v3326_v50  ;;  %v1209_v7 = vmul.f32 %v1168_v24, %v3326_v50  ;;  %v1213_v6 = vmul.f32 %v1176_v52, %v3326_v50  ;;  %v1218_v16 = vmul.f32 %v1186_v13, %v3324_v56 }
 0x373   :  { %v1217_v17 = vmul.f32 %v1184_v14, %v3326_v50  ;;  %v104_v14 = vld [vmem:[#allocation10 + $0x38] sm:$0xff] }
 0x374   :  { %v2784_v4 = vpack.i.bf16 %v1206_v61, %v1205_v62  ;;  %v2794_v10 = vpack.i.bf16 %v1210_v8, %v1209_v7  ;;  %v2804_v18 = vpack.i.bf16 %v1214_v12, %v1213_v6  ;;  %v102_v6 = vld [vmem:[#allocation10 + $0x28] sm:$0xff]  ;;  %v103_v12 = vld [vmem:[#allocation10 + $0x30] sm:$0xff] }
 0x375   :  { %v2814_v19 = vpack.i.bf16 %v1218_v16, %v1217_v17  ;;  %v105_v16 = vld [vmem:[#allocation10 + $0x40] sm:$0xff]  ;;  %v106_v17 = vld [vmem:[#allocation10 + $0x48] sm:$0xff] }
 0x376   :  { %2785 = vrot.lane.b32.xlu1 %v2784_v4, %s3052_s24  ;;  %2790 = vrot.lane.b32.xlu0 %v2789_v0, %s3052_s24 }
 0x37a   :  { %2795 = vrot.lane.b32.xlu1 %v2794_v10, %s3052_s24  ;;  %2800 = vrot.lane.b32.xlu0 %v2799_v11, %s3052_s24  ;;  %v101_v11 = vld [vmem:[#allocation10 + $0x20] sm:$0xff] }
 0x37b   :  { %v2668_v13 = vpack.c.bf16 %v102_v6, %v101_v11 }
 0x37d   :  { %2669 = vmatprep.subr.bf16.mxu1 %v2668_v13 }
 0x37e   :  { %2805 = vrot.lane.b32.xlu1 %v2804_v18, %s3052_s24  ;;  %2810 = vrot.lane.b32.xlu0 %v2809_v15, %s3052_s24  ;;  %v2672_v15 = vpack.c.bf16 %v104_v14, %v103_v12  ;;  %v2676_v18 = vpack.c.bf16 %v106_v17, %v105_v16 }
 0x37f   :  { %2671 = vmatpush3.bf16.msra.mxu1 %v2668_v13 }
 0x380   :  { %2673 = vmatprep.subr.bf16.mxu1 %v2672_v15 }
 0x382   :  { %2815 = vrot.lane.b32.xlu1 %v2814_v19, %s3052_s24  ;;  %v107_v19 = vld [vmem:[#allocation10 + $0x50] sm:$0xff] }
 0x383   :  { %2675 = vmatpush3.bf16.msra.mxu1 %v2672_v15 }
 0x384   :  { %2677 = vmatprep.subr.bf16.mxu1 %v2676_v18 }
 0x387   :  { %2679 = vmatpush3.bf16.msra.mxu1 %v2676_v18 }
 0x3e4   :  { %v2781_v20 = vpop.permute.xlu0 %2780 }
 0x3e5   :  { %v2783_v21 = vunpack.i.h.bf16 %v2781_v20  ;;  %v2782_v22 = vunpack.i.l.bf16 %v2781_v20  ;;  %v108_v20 = vld [vmem:[#allocation10 + $0x58] sm:$0xff] }
 0x3e7   :  { %v2620_v24 = vpack.c.bf16 %v2783_v21, %v2782_v22  ;;  %v2680_v21 = vpack.c.bf16 %v108_v20, %v107_v19  ;;  %v98_v22 = vld [vmem:[#allocation10 + $0x8] sm:$0xff] }
 0x3e8   :  { %v2786_v25 = vpop.permute.xlu1 %2785  ;;  %v2791_v44 = vpop.permute.xlu0 %2790 }
 0x3e9   :  { %v2788_v42 = vunpack.i.h.bf16 %v2786_v25  ;;  %v2787_v43 = vunpack.i.l.bf16 %v2786_v25  ;;  %2622 = vmatprep.subr.msk.bf16.mxu0 %vm3344_vm1, %v2620_v24  ;;  %v2793_v48 = vunpack.i.h.bf16 %v2791_v44  ;;  %v2792_v51 = vunpack.i.l.bf16 %v2791_v44  ;;  %2681 = vmatprep.subr.bf16.mxu1 %v2680_v21  ;;  %v99_v44 = vld [vmem:[#allocation10 + $0x10] sm:$0xff] }
 0x3ea   :  { %2625 = vmatpush3.bf16.xpose.msk.msra.mxu0 %vm3344_vm1, %v2620_v24  ;;  %2683 = vmatpush3.bf16.msra.mxu1 %v2680_v21 }
 0x3eb   :  { %v2626_v46 = vpack.c.bf16 %v2788_v42, %v2787_v43  ;;  %v2632_v52 = vpack.c.bf16 %v2793_v48, %v2792_v51 }
 0x3ec   :  { %v2796_v53 = vpop.permute.xlu1 %2795  ;;  %v2801_v58 = vpop.permute.xlu0 %2800 }
 0x3ed   :  { %2628 = vmatprep.subr.msk.bf16.mxu0 %vm3344_vm1, %v2626_v46  ;;  %v2798_v54 = vunpack.i.h.bf16 %v2796_v53  ;;  %v2797_v55 = vunpack.i.l.bf16 %v2796_v53  ;;  %v2803_v59 = vunpack.i.h.bf16 %v2801_v58  ;;  %v2802_v60 = vunpack.i.l.bf16 %v2801_v58  ;;  %v111_v58 = vld [vmem:[#allocation10 + $0x70] sm:$0xff] }
 0x3ef   :  { %v2638_v57 = vpack.c.bf16 %v2798_v54, %v2797_v55  ;;  %v2644_v61 = vpack.c.bf16 %v2803_v59, %v2802_v60  ;;  %v109_v54 = vld [vmem:[#allocation10 + $0x60] sm:$0xff]  ;;  %v110_v55 = vld [vmem:[#allocation10 + $0x68] sm:$0xff]  ;;  %v112_v59 = vld [vmem:[#allocation10 + $0x78] sm:$0xff] }
 0x3f0   :  { %v2806_v62 = vpop.permute.xlu1 %2805  ;;  %v2811_v63 = vpop.permute.xlu0 %2810  ;;  %v2688_v60 = vpack.c.bf16 %v112_v59, %v111_v58 }
 0x3f1   :  { %v2808_v1 = vunpack.i.h.bf16 %v2806_v62  ;;  %v2807_v2 = vunpack.i.l.bf16 %v2806_v62  ;;  %v2813_v4 = vunpack.i.h.bf16 %v2811_v63  ;;  %v2812_v0 = vunpack.i.l.bf16 %v2811_v63  ;;  %v114_v62 = vld [vmem:[#allocation10 + $0x88] sm:$0xff] }
 0x3f2   :  { %2631 = vmatpush3.bf16.xpose.msk.msra.mxu0 %vm3344_vm1, %v2626_v46 }
 0x3f3   :  { %2634 = vmatprep.subr.msk.bf16.mxu0 %vm3344_vm1, %v2632_v52  ;;  %v2650_v3 = vpack.c.bf16 %v2808_v1, %v2807_v2  ;;  %v2656_v7 = vpack.c.bf16 %v2813_v4, %v2812_v0  ;;  %v115_v2 = vld [vmem:[#allocation10 + $0x90] sm:$0xff] }
 0x3f4   :  { %v2816_v8 = vpop.permute.xlu1 %2815 }
 0x3f5   :  { %v2818_v5 = vunpack.i.h.bf16 %v2816_v8  ;;  %v2817_v9 = vunpack.i.l.bf16 %v2816_v8 }
 0x3f7   :  { %v2662_v10 = vpack.c.bf16 %v2818_v5, %v2817_v9 }
 0x3fa   :  { %2637 = vmatpush3.bf16.xpose.msk.msra.mxu0 %vm3344_vm1, %v2632_v52  ;;  %v100_v52 = vld [vmem:[#allocation10 + $0x18] sm:$0xff] }
 0x3fb   :  { %2640 = vmatprep.subr.msk.bf16.mxu0 %vm3344_vm1, %v2638_v57 }
 0x402   :  { %2643 = vmatpush3.bf16.xpose.msk.msra.mxu0 %vm3344_vm1, %v2638_v57  ;;  %v2684_v57 = vpack.c.bf16 %v110_v55, %v109_v54 }
 0x403   :  { %2646 = vmatprep.subr.msk.bf16.mxu0 %vm3344_vm1, %v2644_v61 }
 0x404   :  { %2685 = vmatprep.subr.bf16.mxu1 %v2684_v57 }
 0x405   :  { %2687 = vmatpush3.bf16.msra.mxu1 %v2684_v57 }
 0x406   :  { %2689 = vmatprep.subr.bf16.mxu1 %v2688_v60 }
 0x409   :  { %2691 = vmatpush3.bf16.msra.mxu1 %v2688_v60 }
 0x40a   :  { %2649 = vmatpush3.bf16.xpose.msk.msra.mxu0 %vm3344_vm1, %v2644_v61  ;;  %v113_v61 = vld [vmem:[#allocation10 + $0x80] sm:$0xff] }
 0x40b   :  { %2652 = vmatprep.subr.msk.bf16.mxu0 %vm3344_vm1, %v2650_v3  ;;  %v2692_v1 = vpack.c.bf16 %v114_v62, %v113_v61 }
 0x40d   :  { %2693 = vmatprep.subr.bf16.mxu1 %v2692_v1 }
 0x40e   :  { %2695 = vmatpush3.bf16.msra.mxu1 %v2692_v1 }
 0x412   :  { %2655 = vmatpush3.bf16.xpose.msk.msra.mxu0 %vm3344_vm1, %v2650_v3 }
 0x413   :  { %2658 = vmatprep.subr.msk.bf16.mxu0 %vm3344_vm1, %v2656_v7 }
 0x41a   :  { %2661 = vmatpush3.bf16.xpose.msk.msra.mxu0 %vm3344_vm1, %v2656_v7 }
 0x41b   :  { %2664 = vmatprep.subr.msk.bf16.mxu0 %vm3344_vm1, %v2662_v10 }
 0x422   :  { %2667 = vmatpush3.bf16.xpose.msk.msra.mxu0 %vm3344_vm1, %v2662_v10 }
 0x429   :  { %2439 = vmatmul.mubr.msk.f32.vlgmr.msra.gmra.mrb[16].mxu0 %vm133_vm0, %v3316_v47 }
 0x42a   :  { %2441 = vmatprep.mubr.msk.f32.mxu0 %vm133_vm0, %v3326_v50 }
 0x42d   :  { %2442 = vmatmul.mubr.msk.f32.gmra.mrb[18].mxu0 %vm133_vm0, %v3324_v56 }
 0x4fc   :  { %v2440_v24 = vpop.f32.mrb[16].mxu0 }
 0x4fd   :  { %v1447_v25 = vadd.f32 %v2440_v24, %v98_v22  ;;  %v1441_v42 = vpop.f32.mrb[17].mxu0 }
 0x4fe   :  { %v1442_v43 = vadd.f32 %v1441_v42, %v97_v23 }
 0x4ff   :  { %1462 = vmax.xlane.f32.xlu1 %v1447_v25 }
 0x500   :  { %v2443_v46 = vpop.f32.mrb[18].mxu0  ;;  %1460 = vmax.xlane.f32.xlu0 %v1442_v43 }
 0x501   :  { %v1451_v48 = vpop.f32.mrb[19].mxu0  ;;  %v1457_v53 = vadd.f32 %v2443_v46, %v100_v52 }
 0x502   :  { %v1452_v51 = vadd.f32 %v1451_v48, %v99_v44 }
 0x504   :  { %1464 = vmax.xlane.f32.xlu0 %v1452_v51 }
 0x508   :  { %1466 = vmax.xlane.f32.xlu0 %v1457_v53 }
 0x510   :  { %1221 = vrot.lane.b32.xlu1 %v3226_v26, %s3053_s12  ;;  %v116_v26 = vld [vmem:[#allocation10 + $0x98] sm:$0xff] }
 0x511   :  { %v2696_v3 = vpack.c.bf16 %v116_v26, %v115_v2 }
 0x513   :  { %2697 = vmatprep.subr.bf16.mxu1 %v2696_v3 }
 0x514   :  { %1223 = vrot.lane.b32.xlu1 %v3232_v28, %s3053_s12  ;;  %2699 = vmatpush3.bf16.msra.mxu1 %v2696_v3 }
 0x518   :  { %1225 = vrot.lane.b32.xlu1 %v3240_v30, %s3053_s12 }
 0x51c   :  { %1229 = vrot.lane.b32.xlu1 %v3248_v32, %s3053_s12 }
 0x51e   :  { %1219 = vrot.lane.b32.xlu0 %v3230_v27, %s3053_s12 }
 0x520   :  { %1233 = vrot.lane.b32.xlu1 %v3256_v34, %s3053_s12 }
 0x522   :  { %1227 = vrot.lane.b32.xlu0 %v3236_v29, %s3053_s12 }
 0x524   :  { %1237 = vrot.lane.b32.xlu1 %v3264_v36, %s3053_s12 }
 0x526   :  { %1231 = vrot.lane.b32.xlu0 %v3244_v31, %s3053_s12 }
 0x528   :  { %1241 = vrot.lane.b32.xlu1 %v3272_v38, %s3053_s12 }
 0x52a   :  { %1235 = vrot.lane.b32.xlu0 %v3252_v33, %s3053_s12 }
 0x52c   :  { %1245 = vrot.lane.b32.xlu1 %v3280_v40, %s3053_s12 }
 0x52e   :  { %1239 = vrot.lane.b32.xlu0 %v3260_v35, %s3053_s12 }
 0x530   :  { %1249 = vrot.lane.b32.xlu1 %v3286_v41, %s3053_s12 }
 0x532   :  { %1243 = vrot.lane.b32.xlu0 %v3268_v37, %s3053_s12 }
 0x536   :  { %1247 = vrot.lane.b32.xlu0 %v3276_v39, %s3053_s12 }
 0x58c   :  { %v1463_v27 = vpop.xlane.xlu1 %1462 }
 0x58d   :  { %v1469_v28 = vsub.f32 %v1447_v25, %v1463_v27  ;;  %v1461_v29 = vpop.xlane.xlu0 %1460 }
 0x58e   :  { %v1468_v30 = vsub.f32 %v1442_v43, %v1461_v29 }
 0x58f   :  { %v1474_v31 = vmul.f32 1.442695, %v1469_v28 }
 0x590   :  { %v1472_v32 = vmul.f32 1.442695, %v1468_v30  ;;  %v1222_v33 = vpop.permute.xlu1 %1221 }
 0x591   :  { %v1465_v34 = vpop.xlane.xlu0 %1464  ;;  %v1268_v7 = vmul.f32 %v1222_v33, %v3316_v47 }
 0x592   :  { %2867 = vpow2.f32 %v1472_v32  ;;  %v1470_v36 = vsub.f32 %v1452_v51, %v1465_v34 }
 0x593   :  { %2869 = vpow2.f32 %v1474_v31 }
 0x594   :  { %v1476_v35 = vmul.f32 1.442695, %v1470_v36  ;;  %v1224_v38 = vpop.permute.xlu1 %1223 }
 0x595   :  { %v1467_v40 = vpop.xlane.xlu0 %1466  ;;  %v1269_v39 = vmul.f32 %v1224_v38, %v3326_v50 }
 0x596   :  { %2871 = vpow2.f32 %v1476_v35  ;;  %v1471_v41 = vsub.f32 %v1457_v53, %v1467_v40 }
 0x598   :  { %v1478_v37 = vmul.f32 1.442695, %v1471_v41  ;;  %v1226_v63 = vpop.permute.xlu1 %1225 }
 0x599   :  { %v1270_v4 = vmul.f32 %v1226_v63, %v3324_v56  ;;  %v1220_v0 = vpop.permute.xlu0 %1219 }
 0x59a   :  { %2873 = vpow2.f32 %v1478_v37  ;;  %v1267_v8 = vmul.f32 %v1220_v0, %v3318_v49 }
 0x59b   :  { %v2824_v5 = vpack.i.bf16 %v1270_v4, %v1269_v39 }
 0x59c   :  { %v3422_v9 = vpop.eup %2867  ;;  %v2819_v10 = vpack.i.bf16 %v1268_v7, %v1267_v8  ;;  %v1230_v11 = vpop.permute.xlu1 %1229 }
 0x59d   :  { %v3424_v6 = vpop.eup %2869  ;;  %v1272_v12 = vmul.f32 %v1230_v11, %v3316_v47  ;;  %2825 = vrot.lane.b32.xlu1 %v2824_v5, %s3053_s12  ;;  %2476 = vmatprep.mubr.f32.mxu1 %v3422_v9  ;;  %v1228_v13 = vpop.permute.xlu0 %1227 }
 0x59e   :  { %v1271_v14 = vmul.f32 %v1228_v13, %v3318_v49  ;;  %2477 = vmatmul.mubr.f32.vlgmr.msra.gmra.mrb[4].mxu1 %v3424_v6  ;;  %2820 = vrot.lane.b32.xlu0 %v2819_v10, %s3053_s12 }
 0x5a0   :  { %v3432_v15 = vpop.eup %2871  ;;  %v2829_v16 = vpack.i.bf16 %v1272_v12, %v1271_v14  ;;  %v1234_v17 = vpop.permute.xlu1 %1233 }
 0x5a1   :  { %v1274_v18 = vmul.f32 %v1234_v17, %v3324_v56  ;;  %2479 = vmatprep.mubr.f32.mxu1 %v3432_v15  ;;  %v1232_v19 = vpop.permute.xlu0 %1231 }
 0x5a2   :  { %v1273_v20 = vmul.f32 %v1232_v19, %v3326_v50  ;;  %2830 = vrot.lane.b32.xlu0 %v2829_v16, %s3053_s12 }
 0x5a4   :  { %v3438_v21 = vpop.eup %2873  ;;  %v2834_v22 = vpack.i.bf16 %v1274_v18, %v1273_v20  ;;  %v1238_v23 = vpop.permute.xlu1 %1237 }
 0x5a5   :  { %v1276_v24 = vmul.f32 %v1238_v23, %v3316_v47  ;;  %2480 = vmatmul.mubr.f32.gmra.mrb[6].mxu1 %v3438_v21  ;;  %v1236_v25 = vpop.permute.xlu0 %1235 }
 0x5a6   :  { %v1275_v42 = vmul.f32 %v1236_v25, %v3318_v49  ;;  %2835 = vrot.lane.b32.xlu1 %v2834_v22, %s3053_s12 }
 0x5a8   :  { %v2839_v43 = vpack.i.bf16 %v1276_v24, %v1275_v42  ;;  %v1242_v44 = vpop.permute.xlu1 %1241 }
 0x5a9   :  { %v1278_v46 = vmul.f32 %v1242_v44, %v3324_v56  ;;  %v1240_v48 = vpop.permute.xlu0 %1239 }
 0x5aa   :  { %v1277_v51 = vmul.f32 %v1240_v48, %v3326_v50  ;;  %2840 = vrot.lane.b32.xlu0 %v2839_v43, %s3053_s12 }
 0x5ac   :  { %v2844_v52 = vpack.i.bf16 %v1278_v46, %v1277_v51  ;;  %v1246_v53 = vpop.permute.xlu1 %1245  ;;  %v2899_v46 = vld [vmem:[#allocation2 + $0x8] sm:$0xff] }
 0x5ad   :  { %v1280_v54 = vmul.f32 %v1246_v53, %v3316_v47  ;;  %v1244_v55 = vpop.permute.xlu0 %1243 }
 0x5ae   :  { %v1279_v57 = vmul.f32 %v1244_v55, %v3318_v49  ;;  %2845 = vrot.lane.b32.xlu1 %v2844_v52, %s3053_s12  ;;  %v2900_v52 = vld [vmem:[#allocation2] sm:$0xff] }
 0x5b0   :  { %v2849_v58 = vpack.i.bf16 %v1280_v54, %v1279_v57  ;;  %v1250_v59 = vpop.permute.xlu1 %1249  ;;  %v2901_v54 = vld [vmem:[#allocation2 + $0x10] sm:$0xff]  ;;  %v2902_v57 = vld [vmem:[#allocation2 + $0x18] sm:$0xff] }
 0x5b1   :  { %v1282_v60 = vmul.f32 %v1250_v59, %v3324_v56  ;;  %v1248_v61 = vpop.permute.xlu0 %1247 }
 0x5b2   :  { %v1281_v62 = vmul.f32 %v1248_v61, %v3326_v50  ;;  %2850 = vrot.lane.b32.xlu0 %v2849_v58, %s3053_s12 }
 0x5b4   :  { %v2854_v1 = vpack.i.bf16 %v1282_v60, %v1281_v62 }
 0x5b6   :  { %2855 = vrot.lane.b32.xlu1 %v2854_v1, %s3053_s12 }
 0x60f   :  { %v2826_v2 = vpop.permute.xlu1 %2825 }
 0x610   :  { %v2821_v26 = vpop.permute.xlu0 %2820  ;;  %v2828_v47 = vunpack.i.h.bf16 %v2826_v2  ;;  %v2827_v3 = vunpack.i.l.bf16 %v2826_v2 }
 0x611   :  { %v2823_v27 = vunpack.i.h.bf16 %v2821_v26  ;;  %v2822_v49 = vunpack.i.l.bf16 %v2821_v26 }
 0x612   :  { %v2704_v30 = vpack.c.bf16 %v2828_v47, %v2827_v3 }
 0x613   :  { %v2700_v28 = vpack.c.bf16 %v2823_v27, %v2822_v49 }
 0x614   :  { %v2831_v29 = vpop.permute.xlu0 %2830 }
 0x615   :  { %v2833_v31 = vunpack.i.h.bf16 %v2831_v29  ;;  %v2832_v32 = vunpack.i.l.bf16 %v2831_v29  ;;  %2701 = vmatprep.subr.bf16.mxu1 %v2700_v28 }
 0x616   :  { %2703 = vmatpush3.bf16.msra.mxu1 %v2700_v28 }
 0x617   :  { %2705 = vmatprep.subr.bf16.mxu1 %v2704_v30  ;;  %v2708_v50 = vpack.c.bf16 %v2833_v31, %v2832_v32 }
 0x618   :  { %v2836_v56 = vpop.permute.xlu1 %2835 }
 0x619   :  { %v2838_v33 = vunpack.i.h.bf16 %v2836_v56  ;;  %v2837_v34 = vunpack.i.l.bf16 %v2836_v56 }
 0x61a   :  { %2707 = vmatpush3.bf16.msra.mxu1 %v2704_v30 }
 0x61b   :  { %2709 = vmatprep.subr.bf16.mxu1 %v2708_v50  ;;  %v2712_v35 = vpack.c.bf16 %v2838_v33, %v2837_v34 }
 0x61c   :  { %v2841_v36 = vpop.permute.xlu0 %2840 }
 0x61d   :  { %v2843_v38 = vunpack.i.h.bf16 %v2841_v36  ;;  %v2842_v40 = vunpack.i.l.bf16 %v2841_v36 }
 0x61e   :  { %2711 = vmatpush3.bf16.msra.mxu1 %v2708_v50 }
 0x61f   :  { %2713 = vmatprep.subr.bf16.mxu1 %v2712_v35  ;;  %v2716_v37 = vpack.c.bf16 %v2843_v38, %v2842_v40  ;;  %v1794_v38 = vld [vmem:[#allocation8] sm:$0xff]  ;;  %v1795_v40 = vld [vmem:[#allocation8 + $0x8] sm:$0xff] }
 0x620   :  { %v2846_v41 = vpop.permute.xlu1 %2845 }
 0x621   :  { %v2848_v63 = vunpack.i.h.bf16 %v2846_v41  ;;  %v2847_v39 = vunpack.i.l.bf16 %v2846_v41  ;;  %v2732_v41 = vpack.c.bf16 %v1795_v40, %v1794_v38 }
 0x622   :  { %2715 = vmatpush3.bf16.msra.mxu1 %v2712_v35 }
 0x623   :  { %2717 = vmatprep.subr.bf16.mxu1 %v2716_v37  ;;  %v2720_v0 = vpack.c.bf16 %v2848_v63, %v2847_v39  ;;  %2733 = vmatprep.subr.bf16.mxu0 %v2732_v41  ;;  %v1797_v63 = vld [vmem:[#allocation8 + $0x18] sm:$0xff] }
 0x624   :  { %v2851_v4 = vpop.permute.xlu0 %2850  ;;  %2735 = vmatpush3.bf16.msra.mxu0 %v2732_v41 }
 0x625   :  { %v2853_v7 = vunpack.i.h.bf16 %v2851_v4  ;;  %v2852_v8 = vunpack.i.l.bf16 %v2851_v4 }
 0x626   :  { %2719 = vmatpush3.bf16.msra.mxu1 %v2716_v37  ;;  %v1796_v37 = vld [vmem:[#allocation8 + $0x10] sm:$0xff] }
 0x627   :  { %2721 = vmatprep.subr.bf16.mxu1 %v2720_v0  ;;  %v2724_v10 = vpack.c.bf16 %v2853_v7, %v2852_v8  ;;  %v2736_v39 = vpack.c.bf16 %v1797_v63, %v1796_v37 }
 0x628   :  { %v2856_v5 = vpop.permute.xlu1 %2855 }
 0x629   :  { %v2858_v11 = vunpack.i.h.bf16 %v2856_v5  ;;  %v2857_v12 = vunpack.i.l.bf16 %v2856_v5  ;;  %2737 = vmatprep.subr.bf16.mxu0 %v2736_v39 }
 0x62a   :  { %2723 = vmatpush3.bf16.msra.mxu1 %v2720_v0  ;;  %2739 = vmatpush3.bf16.msra.mxu0 %v2736_v39 }
 0x62b   :  { %2725 = vmatprep.subr.bf16.mxu1 %v2724_v10  ;;  %v2728_v13 = vpack.c.bf16 %v2858_v11, %v2857_v12 }
 0x62e   :  { %2727 = vmatpush3.bf16.msra.mxu1 %v2724_v10 }
 0x62f   :  { %2729 = vmatprep.subr.bf16.mxu1 %v2728_v13 }
 0x632   :  { %2731 = vmatpush3.bf16.msra.mxu1 %v2728_v13  ;;  %v1780_v13 = vsub.s32 2, %v3188_v45 }
 0x671   :  { %v2478_v14 = vpop.f32.mrb[4].mxu1 }
 0x672   :  { %2875 = vrcp.f32 %v2478_v14  ;;  %v1546_v16 = vpop.f32.mrb[5].mxu1 }
 0x673   :  { %2877 = vrcp.f32 %v1546_v16 }
 0x678   :  { %v2481_v17 = vpop.f32.mrb[6].mxu1 }
 0x679   :  { %2879 = vrcp.f32 %v2481_v17  ;;  %v1556_v18 = vpop.f32.mrb[7].mxu1 }
 0x67a   :  { %2881 = vrcp.f32 %v1556_v18  ;;  %v1788_v18 = vsub.s32 3, %v3188_v45 }
 0x67c   :  { %v2876_v19 = vpop.eup %2875 }
 0x67d   :  { %v2878_v20 = vpop.eup %2877  ;;  %v1570_v23 = vmul.f32 %v2876_v19, %v3424_v6  ;;  %v3487_v19 = vld [vmem:[%s3530_s4] sm:$0xff]  ;;  %s3054_s4 = smov [#allocation11]  }
 0x67e   :  { %v1569_v22 = vmul.f32 %v2878_v20, %v3422_v9  ;;  %v1781_v20 = vrot.slane %v3487_v19, %v1780_v13  ;;  %s2054_s15 = sshll.u32 %s3054_s4, 4  ;;  %s2055_s15 = int_to_ptr.vmem [resolvable:$true] %s2054_s15 }
 0x67f   :  { %s3014_s16 = scalar_lea.vmem %s2055_s15, 512  ;;  %p3019_p13 = scmp.lt.s32.totalorder %s2055_s15, %s2055_s15 }
 0x680   :  { %2514 = vmatprep.mubr.f32.mxu1 %v1569_v22  ;;  %p3015_p12 = scmp.ne.s32.totalorder %s2055_s15, %s3014_s16  ;;  %p3020_p0 = scmp.lt.s32.totalorder %s3014_s16, %s3014_s16 }
 0x681   :  { %2515 = vmatmul.mubr.f32.vlgmr.msra.gmra.mrb[8].mxu1 %v1570_v23 }
 0x682   :  { %p3021_p1 = por %p3020_p0, %p3019_p13 }
 0x683   :  { %v2880_v24 = vpop.eup %2879 }
 0x684   :  { %v2882_v25 = vpop.eup %2881  ;;  %v1572_v43 = vmul.f32 %v2880_v24, %v3438_v21  ;;  %p3022_p2 = pnand %p3021_p1, %p3015_p12 }
 0x685   :  { %v1571_v42 = vmul.f32 %v2882_v25, %v3432_v15 }
 0x687   :  { %2517 = vmatprep.mubr.f32.mxu1 %v1571_v42 }
 0x688   :  { %2518 = vmatmul.mubr.f32.gmra.mrb[10].mxu1 %v1572_v43  ;;  %v1789_v43 = vrot.slane %v3487_v19, %v1788_v18 }
 0x754   :  { %v2516_v44 = vpop.f32.mrb[8].mxu1 }
 0x755   :  { %v3458_v48 = vadd.f32 %v2899_v46, %v2516_v44  ;;  %v1703_v51 = vpop.f32.mrb[9].mxu1 }
 0x756   :  { %v3460_v53 = vadd.f32 %v2900_v52, %v1703_v51 }
 0x757   :  { %v1729_v9 = vsel %vm133_vm0, %v3458_v48, 0.0 }
 0x758   :  { %1730 = vadd.xlane.f32.xlu1 %v1729_v9  ;;  %v1726_v6 = vsel %vm133_vm0, %v3460_v53, 0.0 }
 0x759   :  { %1727 = vadd.xlane.f32.xlu0 %v1726_v6 }
 0x75b   :  { %v2519_v15 = vpop.f32.mrb[10].mxu1 }
 0x75c   :  { %v1713_v21 = vpop.f32.mrb[11].mxu1  ;;  %v3468_v58 = vadd.f32 %v2902_v57, %v2519_v15 }
 0x75d   :  { %v3466_v55 = vadd.f32 %v2901_v54, %v1713_v21 }
 0x75e   :  { %v1735_v60 = vsel %vm133_vm0, %v3468_v58, 0.0 }
 0x75f   :  { %v1732_v59 = vsel %vm133_vm0, %v3466_v55, 0.0 }
 0x760   :  { %1733 = vadd.xlane.f32.xlu0 %v1732_v59 }
 0x764   :  { %1736 = vadd.xlane.f32.xlu0 %v1735_v60 }
 0x7e5   :  { %v1731_v61 = vpop.xlane.xlu1 %1730 }
 0x7e6   :  { %v1739_v62 = vmul.f32 0.03125, %v1731_v61  ;;  %v1728_v1 = vpop.xlane.xlu0 %1727  ;;  %v1936_v61 = vld [vmem:[#allocation8 + $0x20] sm:$0xff] }
 0x7e7   :  { %v1738_v2 = vmul.f32 0.03125, %v1728_v1 }
 0x7e8   :  { %v1743_v26 = vsub.f32 %v3458_v48, %v1739_v62  ;;  %v1937_v62 = vld [vmem:[#allocation8 + $0x28] sm:$0xff] }
 0x7e9   :  { %v1742_v47 = vsub.f32 %v3460_v53, %v1738_v2  ;;  %v2740_v1 = vpack.c.bf16 %v1937_v62, %v1936_v61  ;;  %v1938_v2 = vld [vmem:[#allocation8 + $0x30] sm:$0xff] }
 0x7ea   :  { %v1747_v3 = vmul.f32 %v1743_v26, %v1743_v26 }
 0x7eb   :  { %v1746_v27 = vmul.f32 %v1742_v47, %v1742_v47  ;;  %2741 = vmatprep.subr.bf16.mxu0 %v2740_v1  ;;  %2748 = vmatprep.subr.bf16.mxu1 %v2740_v1 }
 0x7ec   :  { %v1753_v49 = vsel %vm133_vm0, %v1747_v3, 0.0  ;;  %2750 = vmatpush3.bf16.msra.mxu1 %v2740_v1  ;;  %v1800_v3 = vsub.s32 4, %v3188_v45 }
 0x7ed   :  { %1754 = vadd.xlane.f32.xlu1 %v1753_v49  ;;  %v1734_v28 = vpop.xlane.xlu0 %1733  ;;  %v1750_v29 = vsel %vm133_vm0, %v1746_v27, 0.0 }
 0x7ee   :  { %v1740_v30 = vmul.f32 0.03125, %v1734_v28  ;;  %1751 = vadd.xlane.f32.xlu0 %v1750_v29  ;;  %v1801_v27 = vrot.slane %v3487_v19, %v1800_v3 }
 0x7f0   :  { %v1744_v31 = vsub.f32 %v3466_v55, %v1740_v30 }
 0x7f1   :  { %v1737_v32 = vpop.xlane.xlu0 %1736 }
 0x7f2   :  { %v1741_v56 = vmul.f32 0.03125, %v1737_v32  ;;  %v1748_v50 = vmul.f32 %v1744_v31, %v1744_v31 }
 0x7f4   :  { %v1745_v33 = vsub.f32 %v3468_v58, %v1741_v56  ;;  %v1756_v34 = vsel %vm133_vm0, %v1748_v50, 0.0 }
 0x7f5   :  { %1757 = vadd.xlane.f32.xlu0 %v1756_v34 }
 0x7f6   :  { %v1749_v36 = vmul.f32 %v1745_v33, %v1745_v33 }
 0x7f8   :  { %v1759_v35 = vsel %vm133_vm0, %v1749_v36, 0.0 }
 0x7f9   :  { %1760 = vadd.xlane.f32.xlu1 %v1759_v35 }
 0x87a   :  { %v1755_v4 = vpop.xlane.xlu1 %1754 }
 0x87b   :  { %v1763_v0 = vmul.f32 0.03125, %v1755_v4  ;;  %v1752_v7 = vpop.xlane.xlu0 %1751 }
 0x87c   :  { %v1762_v8 = vmul.f32 0.03125, %v1752_v7 }
 0x87d   :  { %v1767_v5 = vadd.f32 1e-06, %v1763_v0 }
 0x87e   :  { %v1766_v10 = vadd.f32 1e-06, %v1762_v8 }
 0x87f   :  { %2883 = vrsqrt.f32 %v1767_v5 }
 0x880   :  { %2885 = vrsqrt.f32 %v1766_v10 }
 0x882   :  { %v1758_v11 = vpop.xlane.xlu0 %1757 }
 0x883   :  { %v1764_v12 = vmul.f32 0.03125, %v1758_v11 }
 0x885   :  { %v1768_v14 = vadd.f32 1e-06, %v1764_v12 }
 0x886   :  { %v1761_v16 = vpop.xlane.xlu1 %1760 }
 0x887   :  { %2887 = vrsqrt.f32 %v1768_v14  ;;  %v1765_v17 = vmul.f32 0.03125, %v1761_v16 }
 0x889   :  { %v2884_v22 = vpop.eup %2883  ;;  %v1769_v23 = vadd.f32 1e-06, %v1765_v17 }
 0x88a   :  { %v2886_v24 = vpop.eup %2885  ;;  %v1775_v25 = vmul.f32 %v2884_v22, %v1743_v26  ;;  %v1939_v26 = vld [vmem:[#allocation8 + $0x38] sm:$0xff] }
 0x88b   :  { %2889 = vrsqrt.f32 %v1769_v23  ;;  %v1774_v42 = vmul.f32 %v2886_v24, %v1742_v47  ;;  %v2744_v47 = vpack.c.bf16 %v1939_v26, %v1938_v2 }
 0x88c   :  { %v1783_v44 = vmul.f32 %v1781_v20, %v1775_v25 }
 0x88d   :  { %v1782_v46 = vmul.f32 %v1781_v20, %v1774_v42  ;;  %2749 = vmatprep.subr.bf16.mxu1 %v2744_v47 }
 0x88e   :  { %v1791_v52 = vadd.f32 %v1789_v43, %v1783_v44  ;;  %2751 = vmatpush3.bf16.msra.mxu1 %v2744_v47 }
 0x88f   :  { %v1790_v51 = vadd.f32 %v1789_v43, %v1782_v46 }
 0x891   :  { %v2888_v9 = vpop.eup %2887  ;;  %2528 = vmatprep.mubr.msk.f32.mxu0 %vm133_vm0, %v1790_v51 }
 0x892   :  { %2529 = vmatmul.mubr.msk.f32.vlgmr.msra.gmra.mrb[20].mxu0 %vm133_vm0, %v1791_v52  ;;  %v1776_v6 = vmul.f32 %v2888_v9, %v1744_v31 }
 0x893   :  { %2743 = vmatpush3.bf16.msra.mxu0 %v2740_v1 }
 0x894   :  { %v1784_v15 = vmul.f32 %v1781_v20, %v1776_v6  ;;  %2745 = vmatprep.subr.bf16.mxu0 %v2744_v47 }
 0x895   :  { %v2890_v21 = vpop.eup %2889 }
 0x896   :  { %v1792_v54 = vadd.f32 %v1789_v43, %v1784_v15  ;;  %v1777_v57 = vmul.f32 %v2890_v21, %v1745_v33  ;;  %v1942_v15 = vsub.s32 5, %v3188_v45 }
 0x897   :  { %2747 = vmatpush3.bf16.msra.mxu0 %v2744_v47 }
 0x898   :  { %2531 = vmatprep.mubr.msk.f32.mxu0 %vm133_vm0, %v1792_v54  ;;  %v1785_v59 = vmul.f32 %v1781_v20, %v1777_v57  ;;  %v1943_v21 = vrot.slane %v3487_v19, %v1942_v15 }
 0x89a   :  { %v1793_v60 = vadd.f32 %v1789_v43, %v1785_v59 }
 0x89c   :  { %2532 = vmatmul.mubr.msk.f32.gmra.mrb[22].mxu0 %vm133_vm0, %v1793_v60 }
 0x965   :  { %v2530_v49 = vpop.f32.mrb[20].mxu0 }
 0x966   :  { %v1886_v28 = vadd.f32 %v2530_v49, %v1801_v27  ;;  %v1880_v29 = vpop.f32.mrb[21].mxu0 }
 0x967   :  { %v1881_v30 = vadd.f32 %v1880_v29, %v1801_v27 }
 0x968   :  { %v1904_v31 = vmul.f32 0.044715, %v1886_v28  ;;  %v1900_v23 = vmul.f32 0.5, %v1886_v28 }
 0x969   :  { %v1903_v32 = vmul.f32 0.044715, %v1881_v30  ;;  %v1899_v20 = vmul.f32 0.5, %v1881_v30 }
 0x96a   :  { %v1908_v56 = vmul.f32 %v1904_v31, %v1886_v28 }
 0x96b   :  { %v1907_v50 = vmul.f32 %v1903_v32, %v1881_v30 }
 0x96c   :  { %v1912_v33 = vmul.f32 %v1908_v56, %v1886_v28 }
 0x96d   :  { %v1911_v34 = vmul.f32 %v1907_v50, %v1881_v30 }
 0x96e   :  { %v1916_v36 = vadd.f32 %v1912_v33, %v1886_v28 }
 0x96f   :  { %v1915_v35 = vadd.f32 %v1911_v34, %v1881_v30  ;;  %v2533_v38 = vpop.f32.mrb[22].mxu0 }
 0x970   :  { %v1920_v40 = vmul.f32 0.7978846, %v1916_v36  ;;  %v1896_v41 = vadd.f32 %v2533_v38, %v1801_v27  ;;  %v1890_v37 = vpop.f32.mrb[23].mxu0 }
 0x971   :  { %v1891_v63 = vadd.f32 %v1890_v37, %v1801_v27  ;;  %v1919_v39 = vmul.f32 0.7978846, %v1915_v35 }
 0x972   :  { %2891 = vtanh.f32 %v1920_v40  ;;  %v1906_v4 = vmul.f32 0.044715, %v1896_v41  ;;  %v1902_v52 = vmul.f32 0.5, %v1896_v41 }
 0x973   :  { %v1905_v0 = vmul.f32 0.044715, %v1891_v63  ;;  %2893 = vtanh.f32 %v1919_v39  ;;  %v1901_v46 = vmul.f32 0.5, %v1891_v63 }
 0x974   :  { %v1910_v7 = vmul.f32 %v1906_v4, %v1896_v41 }
 0x975   :  { %v1909_v8 = vmul.f32 %v1905_v0, %v1891_v63 }
 0x976   :  { %v1914_v5 = vmul.f32 %v1910_v7, %v1896_v41 }
 0x977   :  { %v1913_v10 = vmul.f32 %v1909_v8, %v1891_v63 }
 0x978   :  { %v1918_v11 = vadd.f32 %v1914_v5, %v1896_v41 }
 0x979   :  { %v1917_v12 = vadd.f32 %v1913_v10, %v1891_v63 }
 0x97a   :  { %v1922_v13 = vmul.f32 0.7978846, %v1918_v11 }
 0x97b   :  { %v1921_v14 = vmul.f32 0.7978846, %v1917_v12 }
 0x97c   :  { %v2892_v16 = vpop.eup %2891  ;;  %2895 = vtanh.f32 %v1922_v13 }
 0x97d   :  { %v2894_v17 = vpop.eup %2893  ;;  %v1928_v18 = vadd.f32 1.0, %v2892_v16  ;;  %2897 = vtanh.f32 %v1921_v14 }
 0x97e   :  { %v1927_v22 = vadd.f32 1.0, %v2894_v17 }
 0x97f   :  { %v1932_v25 = vmul.f32 %v1928_v18, %v1900_v23 }
 0x980   :  { %v1931_v24 = vmul.f32 %v1927_v22, %v1899_v20 }
 0x982   :  { %2542 = vmatprep.mubr.msk.f32.mxu0 %vm133_vm0, %v1931_v24 }
 0x983   :  { %2543 = vmatmul.mubr.msk.f32.vlgmr.msra.gmra.mrb[24].mxu0 %vm133_vm0, %v1932_v25 }
 0x986   :  { %v2896_v42 = vpop.eup %2895 }
 0x987   :  { %v2898_v43 = vpop.eup %2897  ;;  %v1930_v44 = vadd.f32 1.0, %v2896_v42 }
 0x988   :  { %v1929_v51 = vadd.f32 1.0, %v2898_v43 }
 0x989   :  { %v1934_v6 = vmul.f32 %v1930_v44, %v1902_v52 }
 0x98a   :  { %v1933_v9 = vmul.f32 %v1929_v51, %v1901_v46 }
 0x98c   :  { %2545 = vmatprep.mubr.msk.f32.mxu1 %vm133_vm0, %v1933_v9 }
 0x98d   :  { %2546 = vmatmul.mubr.msk.f32.vlgmr.msra.gmra.mrb[12].mxu1 %vm133_vm0, %v1934_v6 }
 0xa56   :  { %v2544_v54 = vpop.f32.mrb[24].mxu0 }
 0xa57   :  { %v2028_v57 = vadd.f32 %v2544_v54, %v1943_v21  ;;  %v2022_v59 = vpop.f32.mrb[25].mxu0 }
 0xa58   :  { %v2023_v60 = vadd.f32 %v2022_v59, %v1943_v21 }
 0xa59   :  { %v2042_v61 = vadd.f32 %v2028_v57, %v3458_v48 }
 0xa5a   :  { %v2041_v62 = vadd.f32 %v2023_v60, %v3460_v53 }
 0xa5b   :  { %2046 = vst.msk [vmem:[#allocation11 + $0x8] sm:$0xff] %vm133_vm0, %v2042_v61 }
 0xa5c   :  { %2045 = vst.msk [vmem:[#allocation11] sm:$0xff] %vm133_vm0, %v2041_v62 }
 0xa60   :  { %v2547_v1 = vpop.f32.mrb[12].mxu1 }
 0xa61   :  { %v2038_v2 = vadd.f32 %v2547_v1, %v1943_v21  ;;  %v2032_v26 = vpop.f32.mrb[13].mxu1 }
 0xa62   :  { %v2033_v45 = vadd.f32 %v2032_v26, %v1943_v21 }
 0xa63   :  { %v2044_v19 = vadd.f32 %v2038_v2, %v3468_v58 }
 0xa64   :  { %v2043_v47 = vadd.f32 %v2033_v45, %v3466_v55 }
 0xa65   :  { %2048 = vst.msk [vmem:[#allocation11 + $0x18] sm:$0xff] %vm133_vm0, %v2044_v19 }
 0xa66   :  { %2047 = vst.msk [vmem:[#allocation11 + $0x10] sm:$0xff] %vm133_vm0, %v2043_v47 }
 0xa67   :  { %3025 = shalt.err (!%p3022_p2)
}
 0xa68   :  { %s3026_s19 = scalar_lea.hbm %s3532_s6, 512 }
 0xa69   :  { %p3027_p3 = scmp.ne.s32.totalorder %s3532_s6, %s3026_s19  ;;  %p3030_p4 = scmp.lt.u32.totalorder %s3026_s19, %s3532_s6 }
 0xa6b   :  { %p3032_p5 = pnand %p3030_p4, %p3027_p3 }
 0xa6d   :  { %3035 = shalt.err (!%p3032_p5)
}
 0xa6e   :  { %2060 = dma.vmem_to_hbm [thread:$0]  %s2055_s15, 512, %s3532_s6, [#allocation4], %s3046_s9, %s3046_s9, %s3047_s10  }
 0xa6f   :  { %3042 = dma.done.wait [#allocation4], 512  }
 0xa70   :  { %3043 = vsyncadd [#allocation4], 4294966784 }
 0xa71   :  { %2064 = vsyncpa [#allocation3], 1 }
 0xa72   :  { %2065 = vsyncpa [#allocation6], 1 }
 0xa73   :  { %2066 = vsyncpa [#allocation9], 1 }
 0xa74   :  { %2067 = vsyncpa [#allocation4], 1 }

</bundles_post_ra>
